<compile_context>
chip_gen: v6e
topology: v6e:2x2x1
jax: 0.10.0
libtpu: 0.0.40
codegen_flags: <defaults>
</compile_context>

<pallas_src>
import functools
import math

import jax
import jax.numpy as jnp
from jax.experimental import pallas as pl
from jax.experimental.pallas import tpu as pltpu


# ----------------------------- fused kernel --------------------------------

def _decoder_layer_kernel(x_ref, enc_ref,
                          wqkv1_ref, wo1_ref,
                          wq2_ref, wkv2_ref, wo2_ref,
                          wfc2_ref, wfc1_ref, fcb_ref, ln_ref,
                          o_ref, *, dim_val):
    """Full DecoderLayer for the whole batch in one grid step."""
    f32, bf16 = jnp.float32, jnp.bfloat16
    B, Sx, L = x_ref.shape                 # L = 128-lane padded feature dim
    Se = enc_ref.shape[1]
    inv_d = 1.0 / dim_val                  # LayerNorm moments over the REAL D

    x = x_ref[...]                         # (B, Sx, L); lanes >= dim_val are 0
    xf = x.reshape(B * Sx, L)              # fold batch into matmul M dim
    ln = ln_ref[...]                       # (6, L) f32, gamma/beta zero-padded
    fcb = fcb_ref[...]                     # (2, L) f32, zero-padded biases

    def layernorm(h, g, b):
        # One-pass moments.  Padded lanes of h are exactly 0, so full-lane
        # sums equal sums over the real dim_val features.
        s1 = jnp.sum(h, axis=-1, keepdims=True)
        s2 = jnp.sum(h * h, axis=-1, keepdims=True)
        mu = s1 * inv_d
        var = s2 * inv_d - mu * mu
        return (h - mu) * jax.lax.rsqrt(var + 1e-5) * g + b

    def attention(q2, k3, v3):
        # q2: (B*Sq, L) f32; k3/v3: (B, Sk, L) f32.  Scale already in Wq.
        q3 = q2.reshape(B, -1, L)
        s = jnp.einsum('bqa,bka->bqk', q3.astype(bf16), k3.astype(bf16),
                       preferred_element_type=f32)
        m = jnp.max(s, axis=-1, keepdims=True)
        e = jnp.exp(s - m)
        p = e / jnp.sum(e, axis=-1, keepdims=True)      # exact normalization
        av = jnp.einsum('bqk,bkd->bqd', p.astype(bf16), v3.astype(bf16),
                        preferred_element_type=f32)
        return av.reshape(-1, L)

    # ---- self-attention (fused QKV matmul) + add & norm1 -------------------
    qkv = jnp.dot(xf.astype(bf16), wqkv1_ref[...], preferred_element_type=f32)
    q = qkv[:, :L]                                     # 128-lane boundary slices
    k = qkv[:, L:2 * L].reshape(B, Sx, L)
    v = qkv[:, 2 * L:].reshape(B, Sx, L)
    a = jnp.dot(attention(q, k, v).astype(bf16), wo1_ref[...],
                preferred_element_type=f32)
    xf = layernorm(a + xf, ln[0:1], ln[1:2])

    # ---- cross-attention (K/V from encoder, fused KV matmul) + norm2 -------
    q = jnp.dot(xf.astype(bf16), wq2_ref[...], preferred_element_type=f32)
    encf = enc_ref[...].reshape(B * Se, L)
    kv = jnp.dot(encf.astype(bf16), wkv2_ref[...], preferred_element_type=f32)
    k = kv[:, :L].reshape(B, Se, L)
    v = kv[:, L:].reshape(B, Se, L)
    a = jnp.dot(attention(q, k, v).astype(bf16), wo2_ref[...],
                preferred_element_type=f32)
    xf = layernorm(a + xf, ln[2:3], ln[3:4])

    # ---- feed-forward fc1(elu(fc2(x))) + add & norm3 ------------------------
    h = jnp.dot(xf.astype(bf16), wfc2_ref[...], preferred_element_type=f32) + fcb[0:1]
    # ELU(alpha=1) in f32.  exp(min(h,0))-1 is kept (instead of expm1) for
    # guaranteed Mosaic lowering; numerically within f32 tolerance here.
    h = jnp.where(h > 0, h, jnp.exp(jnp.minimum(h, 0.0)) - 1.0)
    a = jnp.dot(h.astype(bf16), wfc1_ref[...], preferred_element_type=f32) + fcb[1:2]
    xf = layernorm(xf + a, ln[4:5], ln[5:6])

    o_ref[...] = xf.reshape(B, Sx, L)      # lane-dense (128-wide) stores


# ----------------------------- wrapper --------------------------------------

def decoder_layer(x, enc, p):
    """x: (B, Sx, D), enc: (B, Se, D) -> (B, Sx, D)."""
    B, Sx, D = x.shape
    Se = enc.shape[1]
    L = p["lane"]

    # Zero-pad the feature dim to 128 lanes once in the wrapper; padded lanes
    # stay exactly zero through the whole layer (see kernel comments).
    xp = jnp.pad(x, ((0, 0), (0, 0), (0, L - D)))
    encp = jnp.pad(enc, ((0, 0), (0, 0), (0, L - D)))

    def fspec(shape):   # full-array block (single grid step)
        n = len(shape)
        return pl.BlockSpec(shape, lambda i, _n=n: (0,) * _n)

    kernel = functools.partial(_decoder_layer_kernel, dim_val=D)
    out = pl.pallas_call(
        kernel,
        grid=(1,),                       # one step: whole batch at once
        out_shape=jax.ShapeDtypeStruct((B, Sx, L), jnp.float32),
        in_specs=[fspec((B, Sx, L)), fspec((B, Se, L)),
                  fspec((L, 3 * L)), fspec((L, L)),
                  fspec((L, L)), fspec((L, 2 * L)), fspec((L, L)),
                  fspec((L, L)), fspec((L, L)),
                  fspec((2, L)), fspec((6, L))],
        out_specs=fspec((B, Sx, L)),
        compiler_params=pltpu.CompilerParams(
            dimension_semantics=("arbitrary",)),
    )(xp, encp, p["wqkv1"], p["wo1"], p["wq2"], p["wkv2"], p["wo2"],
      p["wfc2"], p["wfc1"], p["fcb"], p["ln"])
    return out[..., :D]


# ----------------------------- params ---------------------------------------

def init_params(key, dim_val, dim_attn, lane=128):
    """Returns (packed_params_for_kernel, raw_torch_layout_params)."""
    D, A, L = dim_val, dim_attn, lane
    ks = iter(jax.random.split(key, 16))
    s = 0.05

    def w(shape):
        return s * jax.random.normal(next(ks), shape, jnp.float32)

    raw = dict(
        attn1=(w((A, D)), w((A, D)), w((D, D)), w((D, D))),   # Wq, Wk, Wv, Wo
        attn2=(w((A, D)), w((A, D)), w((D, D)), w((D, D))),
        fc1=(w((D, D)), w((D,))),
        fc2=(w((D, D)), w((D,))),
        norm1=(jnp.ones((D,), jnp.float32), jnp.zeros((D,), jnp.float32)),
        norm2=(jnp.ones((D,), jnp.float32), jnp.zeros((D,), jnp.float32)),
        norm3=(jnp.ones((D,), jnp.float32), jnp.zeros((D,), jnp.float32)),
    )

    # One-time host-side packing: transpose to (in, out), zero-pad every
    # feature dim to 128 lanes, fuse QKV / KV, fold 1/sqrt(dim_attn) into Wq,
    # and convert matmul weights to bf16 (biases / LN params stay f32).
    scale = 1.0 / math.sqrt(A)

    def padw(m):   # (in, out) real -> zero-padded (L, L), bf16
        return jnp.pad(m, ((0, L - m.shape[0]), (0, L - m.shape[1]))
                       ).astype(jnp.bfloat16)

    def padv(v):   # (n,) real -> zero-padded (L,), f32
        return jnp.pad(v, (0, L - v.shape[0]))

    wq1, wk1, wv1, wo1 = raw["attn1"]
    wq2, wk2, wv2, wo2 = raw["attn2"]
    wfc1, bfc1 = raw["fc1"]
    wfc2, bfc2 = raw["fc2"]

    packed = dict(
        lane=L,
        wqkv1=jnp.concatenate([padw(wq1.T * scale), padw(wk1.T), padw(wv1.T)],
                              axis=1),                                 # (L, 3L)
        wo1=padw(wo1.T),                                               # (L, L)
        wq2=padw(wq2.T * scale),                                       # (L, L)
        wkv2=jnp.concatenate([padw(wk2.T), padw(wv2.T)], axis=1),      # (L, 2L)
        wo2=padw(wo2.T),                                               # (L, L)
        wfc2=padw(wfc2.T),                                             # (L, L)
        wfc1=padw(wfc1.T),                                             # (L, L)
        fcb=jnp.stack([padv(bfc2), padv(bfc1)], axis=0),               # (2, L)
        ln=jnp.stack([padv(raw["norm1"][0]), padv(raw["norm1"][1]),
                      padv(raw["norm2"][0]), padv(raw["norm2"][1]),
                      padv(raw["norm3"][0]), padv(raw["norm3"][1])],
                     axis=0),                                          # (6, L)
    )
    return packed, raw


# ----------------------------- pure-JAX reference ----------------------------

def decoder_layer_ref(x, enc, raw):
    def attn(q_src, kv_src, wq, wk, wv, wo):
        q = q_src @ wq.T
        k = kv_src @ wk.T
        v = kv_src @ wv.T
        s = jnp.einsum('bqa,bka->bqk', q, k) / jnp.sqrt(jnp.float32(wq.shape[0]))
        p = jax.nn.softmax(s, axis=-1)
        return jnp.einsum('bqk,bkd->bqd', p, v) @ wo.T

    def ln(h, g, b):
        mu = h.mean(-1, keepdims=True)
        var = ((h - mu) ** 2).mean(-1, keepdims=True)
        return (h - mu) / jnp.sqrt(var + 1e-5) * g + b

    a = attn(x, x, *raw["attn1"])
    x = ln(a + x, *raw["norm1"])
    a = attn(x, enc, *raw["attn2"])
    x = ln(a + x, *raw["norm2"])
    w1, b1 = raw["fc1"]
    w2, b2 = raw["fc2"]
    h = x @ w2.T + b2
    h = jnp.where(h > 0, h, jnp.exp(jnp.minimum(h, 0.0)) - 1.0)
    a = h @ w1.T + b1
    x = ln(x + a, *raw["norm3"])
    return x


# ----------------------------- main ------------------------------------------

if __name__ == "__main__":
    batch = 2
    dec_seq = 8       # decoder sequence length (queries)
    enc_seq = 16      # encoder sequence length (cross-attention K/V)
    dim_val = 32
    dim_attn = 16

    key = jax.random.PRNGKey(0)
    kp, kx, ke = jax.random.split(key, 3)

    packed, raw = init_params(kp, dim_val, dim_attn)
    x = jax.random.normal(kx, (batch, dec_seq, dim_val), jnp.float32)
    enc = jax.random.normal(ke, (batch, enc_seq, dim_val), jnp.float32)

    out = decoder_layer(x, enc, packed)
    out = jax.block_until_ready(out)

    assert out.shape == (batch, dec_seq, dim_val)
    assert bool(jnp.all(jnp.isfinite(out)))

    ref = decoder_layer_ref(x, enc, raw)
    max_err = float(jnp.max(jnp.abs(out - ref)))
    assert bool(jnp.allclose(out, ref, rtol=2e-2, atol=2e-2)), max_err

    print("KERNEL_OK")
</pallas_src>

<mosaic_0001>
module attributes {stable_mosaic.version = 11 : i64} {
  func.func @_decoder_layer_kernel(%arg0: i32, %arg1: memref<2x8x128xf32, #tpu.memory_space<vmem>>, %arg2: memref<2x16x128xf32, #tpu.memory_space<vmem>>, %arg3: memref<128x384xbf16, #tpu.memory_space<vmem>>, %arg4: memref<128x128xbf16, #tpu.memory_space<vmem>>, %arg5: memref<128x128xbf16, #tpu.memory_space<vmem>>, %arg6: memref<128x256xbf16, #tpu.memory_space<vmem>>, %arg7: memref<128x128xbf16, #tpu.memory_space<vmem>>, %arg8: memref<128x128xbf16, #tpu.memory_space<vmem>>, %arg9: memref<128x128xbf16, #tpu.memory_space<vmem>>, %arg10: memref<2x128xf32, #tpu.memory_space<vmem>>, %arg11: memref<6x128xf32, #tpu.memory_space<vmem>>, %arg12: memref<2x8x128xf32, #tpu.memory_space<vmem>>) attributes {dimension_semantics = [#tpu.dimension_semantics<arbitrary>], iteration_bounds = array<i64: 1>, scalar_prefetch = 0 : i64, scratch_operands = 0 : i64, tpu.core_type = #tpu.core_type<tc>, window_params = [{pipeline_mode = #tpu.pipeline_mode<synchronous>, transform_indices = @transform_0, window_bounds = array<i64: 2, 8, 128>}, {pipeline_mode = #tpu.pipeline_mode<synchronous>, transform_indices = @transform_1, window_bounds = array<i64: 2, 16, 128>}, {pipeline_mode = #tpu.pipeline_mode<synchronous>, transform_indices = @transform_2, window_bounds = array<i64: 128, 384>}, {pipeline_mode = #tpu.pipeline_mode<synchronous>, transform_indices = @transform_3, window_bounds = array<i64: 128, 128>}, {pipeline_mode = #tpu.pipeline_mode<synchronous>, transform_indices = @transform_4, window_bounds = array<i64: 128, 128>}, {pipeline_mode = #tpu.pipeline_mode<synchronous>, transform_indices = @transform_5, window_bounds = array<i64: 128, 256>}, {pipeline_mode = #tpu.pipeline_mode<synchronous>, transform_indices = @transform_6, window_bounds = array<i64: 128, 128>}, {pipeline_mode = #tpu.pipeline_mode<synchronous>, transform_indices = @transform_7, window_bounds = array<i64: 128, 128>}, {pipeline_mode = #tpu.pipeline_mode<synchronous>, transform_indices = @transform_8, window_bounds = array<i64: 128, 128>}, {pipeline_mode = #tpu.pipeline_mode<synchronous>, transform_indices = @transform_9, window_bounds = array<i64: 2, 128>}, {pipeline_mode = #tpu.pipeline_mode<synchronous>, transform_indices = @transform_10, window_bounds = array<i64: 6, 128>}, {pipeline_mode = #tpu.pipeline_mode<synchronous>, transform_indices = @transform_11, window_bounds = array<i64: 2, 8, 128>}]} {
    %c0 = arith.constant 0 : index
    %c0_0 = arith.constant 0 : index
    %c0_1 = arith.constant 0 : index
    %0 = vector.load %arg1[%c0, %c0_0, %c0_1] : memref<2x8x128xf32, #tpu.memory_space<vmem>>, vector<2x8x128xf32>
    %1 = vector.shape_cast %0 : vector<2x8x128xf32> to vector<16x128xf32>
    %c0_2 = arith.constant 0 : index
    %c0_3 = arith.constant 0 : index
    %2 = vector.load %arg11[%c0_2, %c0_3] : memref<6x128xf32, #tpu.memory_space<vmem>>, vector<6x128xf32>
    %c0_4 = arith.constant 0 : index
    %c0_5 = arith.constant 0 : index
    %3 = vector.load %arg10[%c0_4, %c0_5] : memref<2x128xf32, #tpu.memory_space<vmem>>, vector<2x128xf32>
    %4 = arith.truncf %1 : vector<16x128xf32> to vector<16x128xbf16>
    %c0_6 = arith.constant 0 : index
    %c0_7 = arith.constant 0 : index
    %5 = vector.load %arg3[%c0_6, %c0_7] : memref<128x384xbf16, #tpu.memory_space<vmem>>, vector<128x384xbf16>
    %cst = arith.constant dense<0.000000e+00> : vector<16x384xf32>
    %6 = tpu.matmul %4, %5, %cst {dimension_numbers = #tpu.dot_dimension_numbers<[1], [0], [0], [1], [0, 0, 1, 1], [], []>} : vector<16x128xbf16>, vector<128x384xbf16>, vector<16x384xf32> -> vector<16x384xf32>
    %7 = vector.extract_strided_slice %6 {offsets = [0, 0], sizes = [16, 128], strides = [1, 1]} : vector<16x384xf32> to vector<16x128xf32>
    %8 = vector.extract_strided_slice %6 {offsets = [0, 128], sizes = [16, 128], strides = [1, 1]} : vector<16x384xf32> to vector<16x128xf32>
    %9 = vector.shape_cast %8 : vector<16x128xf32> to vector<2x8x128xf32>
    %10 = vector.extract_strided_slice %6 {offsets = [0, 256], sizes = [16, 128], strides = [1, 1]} : vector<16x384xf32> to vector<16x128xf32>
    %11 = vector.shape_cast %10 : vector<16x128xf32> to vector<2x8x128xf32>
    %12 = vector.shape_cast %7 : vector<16x128xf32> to vector<2x8x128xf32>
    %13 = arith.truncf %12 : vector<2x8x128xf32> to vector<2x8x128xbf16>
    %14 = arith.truncf %9 : vector<2x8x128xf32> to vector<2x8x128xbf16>
    "tpu.trace_start"() <{level = 10 : i32, message = "bqa,bka->bqk"}> : () -> ()
    %cst_8 = arith.constant dense<0.000000e+00> : vector<2x8x8xf32>
    %15 = tpu.matmul %13, %14, %cst_8 {dimension_numbers = #tpu.dot_dimension_numbers<[2], [2], [1], [1], [0, 0, 0, 1, 1, 1], [0], [0]>} : vector<2x8x128xbf16>, vector<2x8x128xbf16>, vector<2x8x8xf32> -> vector<2x8x8xf32>
    "tpu.trace_stop"() : () -> ()
    %cst_9 = arith.constant dense<0xFF800000> : vector<2x8xf32>
    %16 = vector.multi_reduction <maximumf>, %15, %cst_9 [2] : vector<2x8x8xf32> to vector<2x8xf32>
    %17 = vector.shape_cast %16 : vector<2x8xf32> to vector<2x8x1xf32>
    %18 = vector.broadcast %17 : vector<2x8x1xf32> to vector<2x8x8xf32>
    %19 = arith.subf %15, %18 : vector<2x8x8xf32>
    %20 = math.exp %19 : vector<2x8x8xf32>
    %cst_10 = arith.constant dense<0.000000e+00> : vector<2x8xf32>
    %21 = vector.multi_reduction <add>, %20, %cst_10 [2] : vector<2x8x8xf32> to vector<2x8xf32>
    %22 = vector.shape_cast %21 : vector<2x8xf32> to vector<2x8x1xf32>
    %23 = vector.broadcast %22 : vector<2x8x1xf32> to vector<2x8x8xf32>
    %24 = arith.divf %20, %23 : vector<2x8x8xf32>
    %25 = arith.truncf %24 : vector<2x8x8xf32> to vector<2x8x8xbf16>
    %26 = arith.truncf %11 : vector<2x8x128xf32> to vector<2x8x128xbf16>
    "tpu.trace_start"() <{level = 10 : i32, message = "bqk,bkd->bqd"}> : () -> ()
    %cst_11 = arith.constant dense<0.000000e+00> : vector<2x8x128xf32>
    %27 = tpu.matmul %25, %26, %cst_11 {dimension_numbers = #tpu.dot_dimension_numbers<[2], [1], [1], [2], [0, 0, 0, 1, 1, 2], [0], [0]>} : vector<2x8x8xbf16>, vector<2x8x128xbf16>, vector<2x8x128xf32> -> vector<2x8x128xf32>
    "tpu.trace_stop"() : () -> ()
    %28 = vector.shape_cast %27 : vector<2x8x128xf32> to vector<16x128xf32>
    %29 = arith.truncf %28 : vector<16x128xf32> to vector<16x128xbf16>
    %c0_12 = arith.constant 0 : index
    %c0_13 = arith.constant 0 : index
    %30 = vector.load %arg4[%c0_12, %c0_13] : memref<128x128xbf16, #tpu.memory_space<vmem>>, vector<128x128xbf16>
    %cst_14 = arith.constant dense<0.000000e+00> : vector<16x128xf32>
    %31 = tpu.matmul %29, %30, %cst_14 {dimension_numbers = #tpu.dot_dimension_numbers<[1], [0], [0], [1], [0, 0, 1, 1], [], []>} : vector<16x128xbf16>, vector<128x128xbf16>, vector<16x128xf32> -> vector<16x128xf32>
    %32 = arith.addf %31, %1 : vector<16x128xf32>
    %33 = vector.extract_strided_slice %2 {offsets = [0, 0], sizes = [1, 128], strides = [1, 1]} : vector<6x128xf32> to vector<1x128xf32>
    %34 = vector.extract_strided_slice %2 {offsets = [1, 0], sizes = [1, 128], strides = [1, 1]} : vector<6x128xf32> to vector<1x128xf32>
    %cst_15 = arith.constant dense<0.000000e+00> : vector<16xf32>
    %35 = vector.multi_reduction <add>, %32, %cst_15 [1] : vector<16x128xf32> to vector<16xf32>
    %36 = vector.shape_cast %35 : vector<16xf32> to vector<16x1xf32>
    %37 = arith.mulf %32, %32 : vector<16x128xf32>
    %cst_16 = arith.constant dense<0.000000e+00> : vector<16xf32>
    %38 = vector.multi_reduction <add>, %37, %cst_16 [1] : vector<16x128xf32> to vector<16xf32>
    %39 = vector.shape_cast %38 : vector<16xf32> to vector<16x1xf32>
    %cst_17 = arith.constant 3.125000e-02 : f32
    %40 = vector.broadcast %cst_17 : f32 to vector<16x1xf32>
    %41 = arith.mulf %36, %40 : vector<16x1xf32>
    %cst_18 = arith.constant 3.125000e-02 : f32
    %42 = vector.broadcast %cst_18 : f32 to vector<16x1xf32>
    %43 = arith.mulf %39, %42 : vector<16x1xf32>
    %44 = arith.mulf %41, %41 : vector<16x1xf32>
    %45 = arith.subf %43, %44 : vector<16x1xf32>
    %46 = vector.broadcast %41 : vector<16x1xf32> to vector<16x128xf32>
    %47 = arith.subf %32, %46 : vector<16x128xf32>
    %cst_19 = arith.constant 9.99999974E-6 : f32
    %48 = vector.broadcast %cst_19 : f32 to vector<16x1xf32>
    %49 = arith.addf %45, %48 : vector<16x1xf32>
    %50 = math.rsqrt %49 : vector<16x1xf32>
    %51 = vector.broadcast %50 : vector<16x1xf32> to vector<16x128xf32>
    %52 = arith.mulf %47, %51 : vector<16x128xf32>
    %53 = vector.broadcast %33 : vector<1x128xf32> to vector<16x128xf32>
    %54 = arith.mulf %52, %53 : vector<16x128xf32>
    %55 = vector.broadcast %34 : vector<1x128xf32> to vector<16x128xf32>
    %56 = arith.addf %54, %55 : vector<16x128xf32>
    %57 = arith.truncf %56 : vector<16x128xf32> to vector<16x128xbf16>
    %c0_20 = arith.constant 0 : index
    %c0_21 = arith.constant 0 : index
    %58 = vector.load %arg5[%c0_20, %c0_21] : memref<128x128xbf16, #tpu.memory_space<vmem>>, vector<128x128xbf16>
    %cst_22 = arith.constant dense<0.000000e+00> : vector<16x128xf32>
    %59 = tpu.matmul %57, %58, %cst_22 {dimension_numbers = #tpu.dot_dimension_numbers<[1], [0], [0], [1], [0, 0, 1, 1], [], []>} : vector<16x128xbf16>, vector<128x128xbf16>, vector<16x128xf32> -> vector<16x128xf32>
    %c0_23 = arith.constant 0 : index
    %c0_24 = arith.constant 0 : index
    %c0_25 = arith.constant 0 : index
    %60 = vector.load %arg2[%c0_23, %c0_24, %c0_25] : memref<2x16x128xf32, #tpu.memory_space<vmem>>, vector<2x16x128xf32>
    %61 = vector.shape_cast %60 : vector<2x16x128xf32> to vector<32x128xf32>
    %62 = arith.truncf %61 : vector<32x128xf32> to vector<32x128xbf16>
    %c0_26 = arith.constant 0 : index
    %c0_27 = arith.constant 0 : index
    %63 = vector.load %arg6[%c0_26, %c0_27] : memref<128x256xbf16, #tpu.memory_space<vmem>>, vector<128x256xbf16>
    %cst_28 = arith.constant dense<0.000000e+00> : vector<32x256xf32>
    %64 = tpu.matmul %62, %63, %cst_28 {dimension_numbers = #tpu.dot_dimension_numbers<[1], [0], [0], [1], [0, 0, 1, 1], [], []>} : vector<32x128xbf16>, vector<128x256xbf16>, vector<32x256xf32> -> vector<32x256xf32>
    %65 = vector.extract_strided_slice %64 {offsets = [0, 0], sizes = [32, 128], strides = [1, 1]} : vector<32x256xf32> to vector<32x128xf32>
    %66 = vector.shape_cast %65 : vector<32x128xf32> to vector<2x16x128xf32>
    %67 = vector.extract_strided_slice %64 {offsets = [0, 128], sizes = [32, 128], strides = [1, 1]} : vector<32x256xf32> to vector<32x128xf32>
    %68 = vector.shape_cast %67 : vector<32x128xf32> to vector<2x16x128xf32>
    %69 = vector.shape_cast %59 : vector<16x128xf32> to vector<2x8x128xf32>
    %70 = arith.truncf %69 : vector<2x8x128xf32> to vector<2x8x128xbf16>
    %71 = arith.truncf %66 : vector<2x16x128xf32> to vector<2x16x128xbf16>
    "tpu.trace_start"() <{level = 10 : i32, message = "bqa,bka->bqk"}> : () -> ()
    %cst_29 = arith.constant dense<0.000000e+00> : vector<2x8x16xf32>
    %72 = tpu.matmul %70, %71, %cst_29 {dimension_numbers = #tpu.dot_dimension_numbers<[2], [2], [1], [1], [0, 0, 0, 1, 1, 1], [0], [0]>} : vector<2x8x128xbf16>, vector<2x16x128xbf16>, vector<2x8x16xf32> -> vector<2x8x16xf32>
    "tpu.trace_stop"() : () -> ()
    %cst_30 = arith.constant dense<0xFF800000> : vector<2x8xf32>
    %73 = vector.multi_reduction <maximumf>, %72, %cst_30 [2] : vector<2x8x16xf32> to vector<2x8xf32>
    %74 = vector.shape_cast %73 : vector<2x8xf32> to vector<2x8x1xf32>
    %75 = vector.broadcast %74 : vector<2x8x1xf32> to vector<2x8x16xf32>
    %76 = arith.subf %72, %75 : vector<2x8x16xf32>
    %77 = math.exp %76 : vector<2x8x16xf32>
    %cst_31 = arith.constant dense<0.000000e+00> : vector<2x8xf32>
    %78 = vector.multi_reduction <add>, %77, %cst_31 [2] : vector<2x8x16xf32> to vector<2x8xf32>
    %79 = vector.shape_cast %78 : vector<2x8xf32> to vector<2x8x1xf32>
    %80 = vector.broadcast %79 : vector<2x8x1xf32> to vector<2x8x16xf32>
    %81 = arith.divf %77, %80 : vector<2x8x16xf32>
    %82 = arith.truncf %81 : vector<2x8x16xf32> to vector<2x8x16xbf16>
    %83 = arith.truncf %68 : vector<2x16x128xf32> to vector<2x16x128xbf16>
    "tpu.trace_start"() <{level = 10 : i32, message = "bqk,bkd->bqd"}> : () -> ()
    %cst_32 = arith.constant dense<0.000000e+00> : vector<2x8x128xf32>
    %84 = tpu.matmul %82, %83, %cst_32 {dimension_numbers = #tpu.dot_dimension_numbers<[2], [1], [1], [2], [0, 0, 0, 1, 1, 2], [0], [0]>} : vector<2x8x16xbf16>, vector<2x16x128xbf16>, vector<2x8x128xf32> -> vector<2x8x128xf32>
    "tpu.trace_stop"() : () -> ()
    %85 = vector.shape_cast %84 : vector<2x8x128xf32> to vector<16x128xf32>
    %86 = arith.truncf %85 : vector<16x128xf32> to vector<16x128xbf16>
    %c0_33 = arith.constant 0 : index
    %c0_34 = arith.constant 0 : index
    %87 = vector.load %arg7[%c0_33, %c0_34] : memref<128x128xbf16, #tpu.memory_space<vmem>>, vector<128x128xbf16>
    %cst_35 = arith.constant dense<0.000000e+00> : vector<16x128xf32>
    %88 = tpu.matmul %86, %87, %cst_35 {dimension_numbers = #tpu.dot_dimension_numbers<[1], [0], [0], [1], [0, 0, 1, 1], [], []>} : vector<16x128xbf16>, vector<128x128xbf16>, vector<16x128xf32> -> vector<16x128xf32>
    %89 = arith.addf %88, %56 : vector<16x128xf32>
    %90 = vector.extract_strided_slice %2 {offsets = [2, 0], sizes = [1, 128], strides = [1, 1]} : vector<6x128xf32> to vector<1x128xf32>
    %91 = vector.extract_strided_slice %2 {offsets = [3, 0], sizes = [1, 128], strides = [1, 1]} : vector<6x128xf32> to vector<1x128xf32>
    %cst_36 = arith.constant dense<0.000000e+00> : vector<16xf32>
    %92 = vector.multi_reduction <add>, %89, %cst_36 [1] : vector<16x128xf32> to vector<16xf32>
    %93 = vector.shape_cast %92 : vector<16xf32> to vector<16x1xf32>
    %94 = arith.mulf %89, %89 : vector<16x128xf32>
    %cst_37 = arith.constant dense<0.000000e+00> : vector<16xf32>
    %95 = vector.multi_reduction <add>, %94, %cst_37 [1] : vector<16x128xf32> to vector<16xf32>
    %96 = vector.shape_cast %95 : vector<16xf32> to vector<16x1xf32>
    %cst_38 = arith.constant 3.125000e-02 : f32
    %97 = vector.broadcast %cst_38 : f32 to vector<16x1xf32>
    %98 = arith.mulf %93, %97 : vector<16x1xf32>
    %cst_39 = arith.constant 3.125000e-02 : f32
    %99 = vector.broadcast %cst_39 : f32 to vector<16x1xf32>
    %100 = arith.mulf %96, %99 : vector<16x1xf32>
    %101 = arith.mulf %98, %98 : vector<16x1xf32>
    %102 = arith.subf %100, %101 : vector<16x1xf32>
    %103 = vector.broadcast %98 : vector<16x1xf32> to vector<16x128xf32>
    %104 = arith.subf %89, %103 : vector<16x128xf32>
    %cst_40 = arith.constant 9.99999974E-6 : f32
    %105 = vector.broadcast %cst_40 : f32 to vector<16x1xf32>
    %106 = arith.addf %102, %105 : vector<16x1xf32>
    %107 = math.rsqrt %106 : vector<16x1xf32>
    %108 = vector.broadcast %107 : vector<16x1xf32> to vector<16x128xf32>
    %109 = arith.mulf %104, %108 : vector<16x128xf32>
    %110 = vector.broadcast %90 : vector<1x128xf32> to vector<16x128xf32>
    %111 = arith.mulf %109, %110 : vector<16x128xf32>
    %112 = vector.broadcast %91 : vector<1x128xf32> to vector<16x128xf32>
    %113 = arith.addf %111, %112 : vector<16x128xf32>
    %114 = arith.truncf %113 : vector<16x128xf32> to vector<16x128xbf16>
    %c0_41 = arith.constant 0 : index
    %c0_42 = arith.constant 0 : index
    %115 = vector.load %arg8[%c0_41, %c0_42] : memref<128x128xbf16, #tpu.memory_space<vmem>>, vector<128x128xbf16>
    %cst_43 = arith.constant dense<0.000000e+00> : vector<16x128xf32>
    %116 = tpu.matmul %114, %115, %cst_43 {dimension_numbers = #tpu.dot_dimension_numbers<[1], [0], [0], [1], [0, 0, 1, 1], [], []>} : vector<16x128xbf16>, vector<128x128xbf16>, vector<16x128xf32> -> vector<16x128xf32>
    %117 = vector.extract_strided_slice %3 {offsets = [0, 0], sizes = [1, 128], strides = [1, 1]} : vector<2x128xf32> to vector<1x128xf32>
    %118 = vector.broadcast %117 : vector<1x128xf32> to vector<16x128xf32>
    %119 = arith.addf %116, %118 : vector<16x128xf32>
    %cst_44 = arith.constant 0.000000e+00 : f32
    %120 = vector.broadcast %cst_44 : f32 to vector<16x128xf32>
    %121 = arith.cmpf ogt, %119, %120 : vector<16x128xf32>
    %cst_45 = arith.constant 0.000000e+00 : f32
    %122 = vector.broadcast %cst_45 : f32 to vector<16x128xf32>
    %123 = arith.minimumf %119, %122 : vector<16x128xf32>
    %124 = math.exp %123 : vector<16x128xf32>
    %cst_46 = arith.constant 1.000000e+00 : f32
    %125 = vector.broadcast %cst_46 : f32 to vector<16x128xf32>
    %126 = arith.subf %124, %125 : vector<16x128xf32>
    %127 = arith.select %121, %119, %126 : vector<16x128xi1>, vector<16x128xf32>
    %128 = arith.truncf %127 : vector<16x128xf32> to vector<16x128xbf16>
    %c0_47 = arith.constant 0 : index
    %c0_48 = arith.constant 0 : index
    %129 = vector.load %arg9[%c0_47, %c0_48] : memref<128x128xbf16, #tpu.memory_space<vmem>>, vector<128x128xbf16>
    %cst_49 = arith.constant dense<0.000000e+00> : vector<16x128xf32>
    %130 = tpu.matmul %128, %129, %cst_49 {dimension_numbers = #tpu.dot_dimension_numbers<[1], [0], [0], [1], [0, 0, 1, 1], [], []>} : vector<16x128xbf16>, vector<128x128xbf16>, vector<16x128xf32> -> vector<16x128xf32>
    %131 = vector.extract_strided_slice %3 {offsets = [1, 0], sizes = [1, 128], strides = [1, 1]} : vector<2x128xf32> to vector<1x128xf32>
    %132 = vector.broadcast %131 : vector<1x128xf32> to vector<16x128xf32>
    %133 = arith.addf %130, %132 : vector<16x128xf32>
    %134 = arith.addf %113, %133 : vector<16x128xf32>
    %135 = vector.extract_strided_slice %2 {offsets = [4, 0], sizes = [1, 128], strides = [1, 1]} : vector<6x128xf32> to vector<1x128xf32>
    %136 = vector.extract_strided_slice %2 {offsets = [5, 0], sizes = [1, 128], strides = [1, 1]} : vector<6x128xf32> to vector<1x128xf32>
    %cst_50 = arith.constant dense<0.000000e+00> : vector<16xf32>
    %137 = vector.multi_reduction <add>, %134, %cst_50 [1] : vector<16x128xf32> to vector<16xf32>
    %138 = vector.shape_cast %137 : vector<16xf32> to vector<16x1xf32>
    %139 = arith.mulf %134, %134 : vector<16x128xf32>
    %cst_51 = arith.constant dense<0.000000e+00> : vector<16xf32>
    %140 = vector.multi_reduction <add>, %139, %cst_51 [1] : vector<16x128xf32> to vector<16xf32>
    %141 = vector.shape_cast %140 : vector<16xf32> to vector<16x1xf32>
    %cst_52 = arith.constant 3.125000e-02 : f32
    %142 = vector.broadcast %cst_52 : f32 to vector<16x1xf32>
    %143 = arith.mulf %138, %142 : vector<16x1xf32>
    %cst_53 = arith.constant 3.125000e-02 : f32
    %144 = vector.broadcast %cst_53 : f32 to vector<16x1xf32>
    %145 = arith.mulf %141, %144 : vector<16x1xf32>
    %146 = arith.mulf %143, %143 : vector<16x1xf32>
    %147 = arith.subf %145, %146 : vector<16x1xf32>
    %148 = vector.broadcast %143 : vector<16x1xf32> to vector<16x128xf32>
    %149 = arith.subf %134, %148 : vector<16x128xf32>
    %cst_54 = arith.constant 9.99999974E-6 : f32
    %150 = vector.broadcast %cst_54 : f32 to vector<16x1xf32>
    %151 = arith.addf %147, %150 : vector<16x1xf32>
    %152 = math.rsqrt %151 : vector<16x1xf32>
    %153 = vector.broadcast %152 : vector<16x1xf32> to vector<16x128xf32>
    %154 = arith.mulf %149, %153 : vector<16x128xf32>
    %155 = vector.broadcast %135 : vector<1x128xf32> to vector<16x128xf32>
    %156 = arith.mulf %154, %155 : vector<16x128xf32>
    %157 = vector.broadcast %136 : vector<1x128xf32> to vector<16x128xf32>
    %158 = arith.addf %156, %157 : vector<16x128xf32>
    %159 = vector.shape_cast %158 : vector<16x128xf32> to vector<2x8x128xf32>
    %c0_55 = arith.constant 0 : index
    %c0_56 = arith.constant 0 : index
    %c0_57 = arith.constant 0 : index
    %160 = vector.load %arg12[%c0_55, %c0_56, %c0_57] : memref<2x8x128xf32, #tpu.memory_space<vmem>>, vector<2x8x128xf32>
    tpu.vector_store %arg12[%c0_55, %c0_56, %c0_57], %159 {strides = array<i32>} : memref<2x8x128xf32, #tpu.memory_space<vmem>>, vector<2x8x128xf32>,
    return
  }
  func.func @transform_0(%arg0: i32) -> (i32, i32, i32) {
    %c0_i32 = arith.constant 0 : i32
    %c0_i32_0 = arith.constant 0 : i32
    %c0_i32_1 = arith.constant 0 : i32
    %c0_i32_2 = arith.constant 0 : i32
    return %c0_i32, %c0_i32_0, %c0_i32_1 : i32, i32, i32
  }
  func.func @transform_1(%arg0: i32) -> (i32, i32, i32) {
    %c0_i32 = arith.constant 0 : i32
    %c0_i32_0 = arith.constant 0 : i32
    %c0_i32_1 = arith.constant 0 : i32
    %c0_i32_2 = arith.constant 0 : i32
    return %c0_i32, %c0_i32_0, %c0_i32_1 : i32, i32, i32
  }
  func.func @transform_2(%arg0: i32) -> (i32, i32) {
    %c0_i32 = arith.constant 0 : i32
    %c0_i32_0 = arith.constant 0 : i32
    %c0_i32_1 = arith.constant 0 : i32
    return %c0_i32, %c0_i32_0 : i32, i32
  }
  func.func @transform_3(%arg0: i32) -> (i32, i32) {
    %c0_i32 = arith.constant 0 : i32
    %c0_i32_0 = arith.constant 0 : i32
    %c0_i32_1 = arith.constant 0 : i32
    return %c0_i32, %c0_i32_0 : i32, i32
  }
  func.func @transform_4(%arg0: i32) -> (i32, i32) {
    %c0_i32 = arith.constant 0 : i32
    %c0_i32_0 = arith.constant 0 : i32
    %c0_i32_1 = arith.constant 0 : i32
    return %c0_i32, %c0_i32_0 : i32, i32
  }
  func.func @transform_5(%arg0: i32) -> (i32, i32) {
    %c0_i32 = arith.constant 0 : i32
    %c0_i32_0 = arith.constant 0 : i32
    %c0_i32_1 = arith.constant 0 : i32
    return %c0_i32, %c0_i32_0 : i32, i32
  }
  func.func @transform_6(%arg0: i32) -> (i32, i32) {
    %c0_i32 = arith.constant 0 : i32
    %c0_i32_0 = arith.constant 0 : i32
    %c0_i32_1 = arith.constant 0 : i32
    return %c0_i32, %c0_i32_0 : i32, i32
  }
  func.func @transform_7(%arg0: i32) -> (i32, i32) {
    %c0_i32 = arith.constant 0 : i32
    %c0_i32_0 = arith.constant 0 : i32
    %c0_i32_1 = arith.constant 0 : i32
    return %c0_i32, %c0_i32_0 : i32, i32
  }
  func.func @transform_8(%arg0: i32) -> (i32, i32) {
    %c0_i32 = arith.constant 0 : i32
    %c0_i32_0 = arith.constant 0 : i32
    %c0_i32_1 = arith.constant 0 : i32
    return %c0_i32, %c0_i32_0 : i32, i32
  }
  func.func @transform_9(%arg0: i32) -> (i32, i32) {
    %c0_i32 = arith.constant 0 : i32
    %c0_i32_0 = arith.constant 0 : i32
    %c0_i32_1 = arith.constant 0 : i32
    return %c0_i32, %c0_i32_0 : i32, i32
  }
  func.func @transform_10(%arg0: i32) -> (i32, i32) {
    %c0_i32 = arith.constant 0 : i32
    %c0_i32_0 = arith.constant 0 : i32
    %c0_i32_1 = arith.constant 0 : i32
    return %c0_i32, %c0_i32_0 : i32, i32
  }
  func.func @transform_11(%arg0: i32) -> (i32, i32, i32) {
    %c0_i32 = arith.constant 0 : i32
    %c0_i32_0 = arith.constant 0 : i32
    %c0_i32_1 = arith.constant 0 : i32
    %c0_i32_2 = arith.constant 0 : i32
    return %c0_i32, %c0_i32_0, %c0_i32_1 : i32, i32, i32
  }
}

</mosaic_0001>

<bundles_post_ra>
// kernel: tpu_custom_call.1
= control target key start
LH: loop header
LB: loop body
LE: loop exit
PB: predicated region body
PF: predicated region fallthrough
CT: control target
= control target key end

     0   :  { %16 = vsyncpa [#allocation3], 0  ;;  %s2635_s0 = inlined_call_operand.hbm [shape: f32[2,8,128], index: 0, kind: input, shape index: {}]   ;;  %s2636_s1 = inlined_call_operand.hbm [shape: f32[2,16,128], index: 1, kind: input, shape index: {}]   ;;  %s2637_s2 = inlined_call_operand.hbm [shape: bf16[128,384], index: 2, kind: input, shape index: {}]   ;;  %s2638_s3 = inlined_call_operand.hbm [shape: bf16[128,128], index: 3, kind: input, shape index: {}]   ;;  %s2639_s4 = inlined_call_operand.hbm [shape: bf16[128,128], index: 4, kind: input, shape index: {}]   ;;  %s2640_s5 = inlined_call_operand.hbm [shape: bf16[128,256], index: 5, kind: input, shape index: {}]   ;;  %s2641_s6 = inlined_call_operand.hbm [shape: bf16[128,128], index: 6, kind: input, shape index: {}]   ;;  %s2642_s7 = inlined_call_operand.hbm [shape: bf16[128,128], index: 7, kind: input, shape index: {}]   ;;  %s2643_s8 = inlined_call_operand.hbm [shape: bf16[128,128], index: 8, kind: input, shape index: {}]   ;;  %s2644_s9 = inlined_call_operand.vmem [shape: f32[2,128], index: 9, kind: input, shape index: {}]   ;;  %s2645_s10 = inlined_call_operand.vmem [shape: f32[6,128], index: 10, kind: input, shape index: {}]   ;;  %s2646_s11 = inlined_call_operand.hbm [shape: f32[2,8,128], index: 11, kind: output, shape index: {}]  }
   0x1   :  { %17 = vsyncpa [#allocation6], 0 }
   0x2   :  { %18 = vsyncpa [#allocation9], 0 }
   0x3   :  { %19 = vsyncpa [#allocation12], 0 }
   0x4   :  { %20 = vsyncpa [#allocation15], 0 }
   0x5   :  { %21 = vsyncpa [#allocation4], 0  ;;  %s2339_s17 = smov [#allocation5]   ;;  %s2340_s19 = smov [#allocation8]  }
   0x6   :  { %s39_s18 = sshll.u32 %s2339_s17, 4  ;;  %s63_s20 = sshll.u32 %s2340_s19, 4  ;;  %s40_s18 = int_to_ptr.vmem [resolvable:$true] %s39_s18  ;;  %s64_s20 = int_to_ptr.vmem [resolvable:$true] %s63_s20 }
   0x7   :  { %s2135_s21 = scalar_lea.vmem %s40_s18, 512  ;;  %p2140_p1 = scmp.lt.s32.totalorder %s40_s18, %s40_s18 }
   0x8   :  { %p2136_p0 = scmp.ne.s32.totalorder %s40_s18, %s2135_s21  ;;  %p2141_p2 = scmp.lt.s32.totalorder %s2135_s21, %s2135_s21 }
   0xa   :  { %p2142_p3 = por %p2141_p2, %p2140_p1 }
   0xc   :  { %p2143_p4 = pnand %p2142_p3, %p2136_p0 }
   0xe   :  { %2146 = shalt.err (!%p2143_p4)
}
   0xf   :  { %s2341_s22 = smov 128   ;;  %s2342_s23 = smov 8  }
  0x10   :  { %45 = dma.hbm_to_vmem [thread:$0]  %s2636_s1, 512, %s40_s18, [#allocation6], %s2341_s22, %s2341_s22, %s2342_s23  }
  0x11   :  { %s2155_s26 = scalar_lea.vmem %s64_s20, 1024  ;;  %p2160_p6 = scmp.lt.s32.totalorder %s64_s20, %s64_s20 }
  0x12   :  { %p2156_p5 = scmp.ne.s32.totalorder %s64_s20, %s2155_s26  ;;  %p2161_p7 = scmp.lt.s32.totalorder %s2155_s26, %s2155_s26 }
  0x14   :  { %p2162_p8 = por %p2161_p7, %p2160_p6 }
  0x16   :  { %p2163_p9 = pnand %p2162_p8, %p2156_p5 }
  0x18   :  { %2166 = shalt.err (!%p2163_p9)
}
  0x19   :  { %s2343_s27 = smov 64   ;;  %s2344_s28 = smov 4  }
  0x1a   :  { %69 = dma.hbm_to_vmem [thread:$0]  %s2638_s3, 1024, %s64_s20, [#allocation9], %s2343_s27, %s2343_s27, %s2344_s28  }
  0x1b   :  { %s2345_s12 = smov [#allocation11]   ;;  %s2346_s14 = smov [#allocation14]  }
  0x1c   :  { %s87_s13 = sshll.u32 %s2345_s12, 4  ;;  %s111_s1 = sshll.u32 %s2346_s14, 4  ;;  %s88_s13 = int_to_ptr.vmem [resolvable:$true] %s87_s13  ;;  %s112_s1 = int_to_ptr.vmem [resolvable:$true] %s111_s1 }
  0x1d   :  { %s2175_s15 = scalar_lea.vmem %s88_s13, 2048  ;;  %p2180_p11 = scmp.lt.s32.totalorder %s88_s13, %s88_s13 }
  0x1e   :  { %p2176_p10 = scmp.ne.s32.totalorder %s88_s13, %s2175_s15  ;;  %p2181_p12 = scmp.lt.s32.totalorder %s2175_s15, %s2175_s15 }
  0x20   :  { %p2182_p13 = por %p2181_p12, %p2180_p11 }
  0x22   :  { %p2183_p0 = pnand %p2182_p13, %p2176_p10 }
  0x24   :  { %2186 = shalt.err (!%p2183_p0)
}
  0x25   :  { %93 = dma.hbm_to_vmem [thread:$0]  %s2640_s5, 2048, %s88_s13, [#allocation12], %s2341_s22, %s2341_s22, %s2342_s23  }
  0x26   :  { %s2195_s3 = scalar_lea.vmem %s112_s1, 1024  ;;  %p2200_p2 = scmp.lt.s32.totalorder %s112_s1, %s112_s1 }
  0x27   :  { %p2196_p1 = scmp.ne.s32.totalorder %s112_s1, %s2195_s3  ;;  %p2201_p3 = scmp.lt.s32.totalorder %s2195_s3, %s2195_s3 }
  0x29   :  { %p2202_p4 = por %p2201_p3, %p2200_p2 }
  0x2b   :  { %p2203_p5 = pnand %p2202_p4, %p2196_p1 }
  0x2d   :  { %2206 = shalt.err (!%p2203_p5)
}
  0x2e   :  { %117 = dma.hbm_to_vmem [thread:$0]  %s2642_s7, 1024, %s112_s1, [#allocation15], %s2343_s27, %s2343_s27, %s2344_s28  }
  0x2f   :  { %s2347_s20 = smov [#allocation2]   ;;  %s2348_s24 = smov [#allocation7]  }
  0x30   :  { %s27_s21 = sshll.u32 %s2347_s20, 4  ;;  %s51_s25 = sshll.u32 %s2348_s24, 4  ;;  %s28_s21 = int_to_ptr.vmem [resolvable:$true] %s27_s21  ;;  %s52_s25 = int_to_ptr.vmem [resolvable:$true] %s51_s25 }
  0x31   :  { %s2215_s5 = scalar_lea.vmem %s28_s21, 256  ;;  %p2220_p7 = scmp.lt.s32.totalorder %s28_s21, %s28_s21 }
  0x32   :  { %p2216_p6 = scmp.ne.s32.totalorder %s28_s21, %s2215_s5  ;;  %p2221_p8 = scmp.lt.s32.totalorder %s2215_s5, %s2215_s5 }
  0x34   :  { %p2222_p9 = por %p2221_p8, %p2220_p7 }
  0x36   :  { %p2223_p10 = pnand %p2222_p9, %p2216_p6 }
  0x38   :  { %2226 = shalt.err (!%p2223_p10)
}
  0x39   :  { %33 = dma.hbm_to_vmem [thread:$0]  %s2635_s0, 256, %s28_s21, [#allocation3], %s2341_s22, %s2341_s22, %s2342_s23  }
  0x3a   :  { %s2235_s7 = scalar_lea.vmem %s52_s25, 3072  ;;  %p2240_p12 = scmp.lt.s32.totalorder %s52_s25, %s52_s25 }
  0x3b   :  { %p2236_p11 = scmp.ne.s32.totalorder %s52_s25, %s2235_s7  ;;  %p2241_p13 = scmp.lt.s32.totalorder %s2235_s7, %s2235_s7 }
  0x3d   :  { %p2242_p0 = por %p2241_p13, %p2240_p12 }
  0x3f   :  { %p2243_p1 = pnand %p2242_p0, %p2236_p11 }
  0x41   :  { %2246 = shalt.err (!%p2243_p1)
}
  0x42   :  { %s2349_s30 = smov 192   ;;  %s2350_s12 = smov 12  }
  0x43   :  { %57 = dma.hbm_to_vmem [thread:$0]  %s2637_s2, 3072, %s52_s25, [#allocation6], %s2349_s30, %s2349_s30, %s2350_s12  }
  0x44   :  { %s2351_s1 = smov [#allocation10]   ;;  %s2352_s16 = smov [#allocation13]  }
  0x45   :  { %s75_s15 = sshll.u32 %s2351_s1, 4  ;;  %s99_s17 = sshll.u32 %s2352_s16, 4  ;;  %s76_s15 = int_to_ptr.vmem [resolvable:$true] %s75_s15  ;;  %s100_s17 = int_to_ptr.vmem [resolvable:$true] %s99_s17 }
  0x46   :  { %s2255_s0 = scalar_lea.vmem %s76_s15, 1024  ;;  %p2260_p3 = scmp.lt.s32.totalorder %s76_s15, %s76_s15 }
  0x47   :  { %p2256_p2 = scmp.ne.s32.totalorder %s76_s15, %s2255_s0  ;;  %p2261_p4 = scmp.lt.s32.totalorder %s2255_s0, %s2255_s0 }
  0x49   :  { %p2262_p5 = por %p2261_p4, %p2260_p3 }
  0x4b   :  { %p2263_p6 = pnand %p2262_p5, %p2256_p2 }
  0x4d   :  { %2266 = shalt.err (!%p2263_p6)
}
  0x4e   :  { %81 = dma.hbm_to_vmem [thread:$0]  %s2639_s4, 1024, %s76_s15, [#allocation9], %s2343_s27, %s2343_s27, %s2344_s28  }
  0x4f   :  { %s2275_s2 = scalar_lea.vmem %s100_s17, 1024  ;;  %p2280_p8 = scmp.lt.s32.totalorder %s100_s17, %s100_s17 }
  0x50   :  { %p2276_p7 = scmp.ne.s32.totalorder %s100_s17, %s2275_s2  ;;  %p2281_p9 = scmp.lt.s32.totalorder %s2275_s2, %s2275_s2 }
  0x52   :  { %p2282_p10 = por %p2281_p9, %p2280_p8 }
  0x54   :  { %p2283_p11 = pnand %p2282_p10, %p2276_p7 }
  0x56   :  { %2286 = shalt.err (!%p2283_p11)
}
  0x57   :  { %105 = dma.hbm_to_vmem [thread:$0]  %s2641_s6, 1024, %s100_s17, [#allocation12], %s2343_s27, %s2343_s27, %s2344_s28  }
  0x58   :  { %s2353_s21 = smov [#allocation16]  }
  0x59   :  { %s123_s24 = sshll.u32 %s2353_s21, 4  ;;  %s124_s24 = int_to_ptr.vmem [resolvable:$true] %s123_s24 }
  0x5a   :  { %s2295_s25 = scalar_lea.vmem %s124_s24, 1024  ;;  %p2300_p13 = scmp.lt.s32.totalorder %s124_s24, %s124_s24 }
  0x5b   :  { %p2296_p12 = scmp.ne.s32.totalorder %s124_s24, %s2295_s25  ;;  %p2301_p0 = scmp.lt.s32.totalorder %s2295_s25, %s2295_s25 }
  0x5d   :  { %p2302_p1 = por %p2301_p0, %p2300_p13 }
  0x5f   :  { %p2303_p2 = pnand %p2302_p1, %p2296_p12 }
  0x61   :  { %2306 = shalt.err (!%p2303_p2)
}
  0x62   :  { %129 = dma.hbm_to_vmem [thread:$0]  %s2643_s8, 1024, %s124_s24, [#allocation15], %s2343_s27, %s2343_s27, %s2344_s28  }
  0x63   :  { %2327 = dma.done.wait [#allocation3], 256  }
  0x64   :  { %2328 = vsyncadd [#allocation3], 4294967040 }
  0x65   :  { %2329 = dma.done.wait [#allocation6], 3584  }
  0x66   :  { %2330 = vsyncadd [#allocation6], 4294963712 }
  0x67   :  { %2331 = dma.done.wait [#allocation9], 2048  }
  0x68   :  { %2332 = vsyncadd [#allocation9], 4294965248 }
  0x69   :  { %2333 = dma.done.wait [#allocation12], 3072  }
  0x6a   :  { %2334 = vsyncadd [#allocation12], 4294964224 }
  0x6b   :  { %2335 = dma.done.wait [#allocation15], 2048  }
  0x6c   :  { %2336 = vsyncadd [#allocation15], 4294965248  ;;  %v2354_v0 = vmov 0   ;;  %v2355_v1 = vmov 0.0   ;;  %vm2356_vm0 = vmmov 0   ;;  %v2476_v23 = vld [vmem:[#allocation2] sm:$0xff] }
  0x6d   :  { %359 = vmatprep.mubr.bf16.mxu0 %v2354_v0  ;;  %1812 = vmatprep.subr.bf16.mxu1 %v2355_v1  ;;  %v1999_v2 = vld [vmem:[#allocation7 + $0xac] ss:$12 sps:$4 sm:$0xff]   ;;  %v2001_v3 = vld [vmem:[#allocation7 + $0xa8] ss:$12 sps:$4 sm:$0xff]   ;;  %v2004_v5 = vld [vmem:[#allocation7 + $0x90] ss:$12 sps:$4 sm:$0xff]  }
  0x6e   :  { %1828 = vmatprep.mubr.msk.bf16.mxu1 %vm2356_vm0, %v2355_v1  ;;  %327 = vmatprep.subr.bf16.mxu0 %v1999_v2  ;;  %v2002_v4 = vld [vmem:[#allocation7 + $0x94] ss:$12 sps:$4 sm:$0xff]   ;;  %v2005_v6 = vld [vmem:[#allocation7 + $0x7c] ss:$12 sps:$4 sm:$0xff]   ;;  %v2007_v7 = vld [vmem:[#allocation7 + $0x78] ss:$12 sps:$4 sm:$0xff]  }
  0x6f   :  { %328 = vmatpush1.bf16.msra.mxu0 %v2001_v3  ;;  %v2008_v8 = vld [vmem:[#allocation7 + $0x64] ss:$12 sps:$4 sm:$0xff]   ;;  %v2010_v9 = vld [vmem:[#allocation7 + $0x60] ss:$12 sps:$4 sm:$0xff]   ;;  %v2013_v13 = vld [vmem:[#allocation7 + $0x48] ss:$12 sps:$4 sm:$0xff]  }
  0x70   :  { %329 = vmatprep.subr.bf16.mxu0 %v2002_v4  ;;  %v2011_v10 = vld [vmem:[#allocation7 + $0x4c] ss:$12 sps:$4 sm:$0xff]   ;;  %v2023_v11 = vld [vmem:[#allocation7 + $0xb0] ss:$12 sps:$4 sm:$0xff]   ;;  %v2014_v14 = vld [vmem:[#allocation7 + $0x34] ss:$12 sps:$4 sm:$0xff]  }
  0x71   :  { %1813 = vmatpush3.bf16.msra.mxu1 %v2023_v11  ;;  %v2024_v12 = vld [vmem:[#allocation7 + $0x98] ss:$12 sps:$4 sm:$0xff]   ;;  %v2016_v15 = vld [vmem:[#allocation7 + $0x30] ss:$12 sps:$4 sm:$0xff]   ;;  %v2025_v16 = vld [vmem:[#allocation7 + $0x80] ss:$12 sps:$4 sm:$0xff]  }
  0x72   :  { %1814 = vmatprep.subr.bf16.mxu1 %v2355_v1  ;;  %v2017_v17 = vld [vmem:[#allocation7 + $0x1c] ss:$12 sps:$4 sm:$0xff]   ;;  %v2019_v19 = vld [vmem:[#allocation7 + $0x18] ss:$12 sps:$4 sm:$0xff]   ;;  %v2022_v22 = vld [vmem:[#allocation7] ss:$12 sps:$4 sm:$0xff]  }
  0x73   :  { %330 = vmatpush1.bf16.msra.mxu0 %v2004_v5  ;;  %v2026_v18 = vld [vmem:[#allocation7 + $0x68] ss:$12 sps:$4 sm:$0xff]   ;;  %v2020_v20 = vld [vmem:[#allocation7 + $0x4] ss:$12 sps:$4 sm:$0xff]   ;;  %v2478_v24 = vld [vmem:[#allocation2 + $0x8] sm:$0xff]  ;;  %vm525_vm1 = vcmask 1043456  }
  0x74   :  { %331 = vmatprep.subr.bf16.mxu0 %v2005_v6  ;;  %v2027_v21 = vld [vmem:[#allocation7 + $0x50] ss:$12 sps:$4 sm:$0xff]   ;;  %v2028_v25 = vld [vmem:[#allocation7 + $0x38] ss:$12 sps:$4 sm:$0xff]   ;;  %v166_v26 = vpack.c.bf16 %v2478_v24, %v2476_v23  ;;  %v2029_v27 = vld [vmem:[#allocation7 + $0x20] ss:$12 sps:$4 sm:$0xff]  }
  0x75   :  { %1815 = vmatpush3.bf16.msra.mxu1 %v2024_v12  ;;  %v2030_v28 = vld [vmem:[#allocation7 + $0x8] ss:$12 sps:$4 sm:$0xff]   ;;  %vm495_vm2 = vcmask 64512   ;;  %v2031_v3 = vld [vmem:[#allocation8 + $0x38] sm:$0xff]   ;;  %v2034_v6 = vld [vmem:[#allocation8 + $0x20] sm:$0xff]   ;;  %vm1104_vm3 = vcmask 130048  }
  0x76   :  { %1816 = vmatprep.subr.bf16.mxu1 %v2355_v1  ;;  %v2032_v4 = vld [vmem:[#allocation8 + $0x30] sm:$0xff]   ;;  %v2033_v5 = vld [vmem:[#allocation8 + $0x28] sm:$0xff]  }
  0x77   :  { %332 = vmatpush1.bf16.msra.mxu0 %v2007_v7  ;;  %v2035_v7 = vld [vmem:[#allocation8 + $0x18] sm:$0xff]  }
  0x78   :  { %333 = vmatprep.subr.bf16.mxu0 %v2008_v8 }
  0x79   :  { %1817 = vmatpush3.bf16.msra.mxu1 %v2025_v16  ;;  %v2036_v16 = vld [vmem:[#allocation8 + $0x10] sm:$0xff]  }
  0x7a   :  { %1818 = vmatprep.subr.bf16.mxu1 %v2355_v1 }
  0x7b   :  { %334 = vmatpush1.bf16.msra.mxu0 %v2010_v9 }
  0x7c   :  { %335 = vmatprep.subr.bf16.mxu0 %v2011_v10 }
  0x7d   :  { %1819 = vmatpush3.bf16.msra.mxu1 %v2026_v18  ;;  %v2038_v18 = vld [vmem:[#allocation8] sm:$0xff]  }
  0x7e   :  { %1820 = vmatprep.subr.bf16.mxu1 %v2355_v1 }
  0x7f   :  { %336 = vmatpush1.bf16.msra.mxu0 %v2013_v13 }
  0x80   :  { %337 = vmatprep.subr.bf16.mxu0 %v2014_v14 }
  0x81   :  { %1821 = vmatpush3.bf16.msra.mxu1 %v2027_v21 }
  0x82   :  { %1822 = vmatprep.subr.bf16.mxu1 %v2355_v1 }
  0x83   :  { %338 = vmatpush1.bf16.msra.mxu0 %v2016_v15 }
  0x84   :  { %339 = vmatprep.subr.bf16.mxu0 %v2017_v17  ;;  %v2037_v17 = vld [vmem:[#allocation8 + $0x8] sm:$0xff]  }
  0x85   :  { %1823 = vmatpush3.bf16.msra.mxu1 %v2028_v25 }
  0x86   :  { %1824 = vmatprep.subr.bf16.mxu1 %v2355_v1 }
  0x87   :  { %340 = vmatpush1.bf16.msra.mxu0 %v2019_v19 }
  0x88   :  { %341 = vmatprep.subr.bf16.mxu0 %v2020_v20 }
  0x89   :  { %1825 = vmatpush3.bf16.msra.mxu1 %v2029_v27 }
  0x8a   :  { %1826 = vmatprep.subr.bf16.mxu1 %v2355_v1 }
  0x8b   :  { %342 = vmatpush1.bf16.msra.mxu0 %v2022_v22 }
  0x8c   :  { %1856 = vmatprep.subr.bf16.mxu0 %v2355_v1 }
  0x8d   :  { %1827 = vmatpush3.bf16.msra.mxu1 %v2030_v28 }
  0x8e   :  { %360 = vmatmul.mubr.bf16.vlgmr.msra.gmra.mxu0 %v166_v26  ;;  %1832 = vmatprep.subr.bf16.mxu1 %v2355_v1 }
  0x8f   :  { %1872 = vmatprep.mubr.msk.bf16.mxu0 %vm2356_vm0, %v2355_v1  ;;  %1857 = vmatpush3.bf16.msra.mxu0 %v2031_v3  ;;  %v2070_v3 = vld [vmem:[#allocation10] sm:$0xff]  }
  0x90   :  { %1829 = vmatmul.mubr.bf16.vlgmr.msra.gmra.mxu1 %v166_v26  ;;  %1858 = vmatprep.subr.bf16.mxu0 %v2355_v1 }
  0x91   :  { %1834 = vmatprep.mubr.msk.bf16.mxu1 %vm2356_vm0, %v2355_v1 }
  0x93   :  { %1859 = vmatpush3.bf16.msra.mxu0 %v2032_v4 }
  0x94   :  { %1860 = vmatprep.subr.bf16.mxu0 %v2355_v1 }
  0x97   :  { %1861 = vmatpush3.bf16.msra.mxu0 %v2033_v5 }
  0x98   :  { %1862 = vmatprep.subr.bf16.mxu0 %v2355_v1 }
  0x9b   :  { %1863 = vmatpush3.bf16.msra.mxu0 %v2034_v6 }
  0x9c   :  { %1864 = vmatprep.subr.bf16.mxu0 %v2355_v1 }
  0x9f   :  { %1865 = vmatpush3.bf16.msra.mxu0 %v2035_v7 }
  0xa0   :  { %1866 = vmatprep.subr.bf16.mxu0 %v2355_v1 }
  0xa3   :  { %1867 = vmatpush3.bf16.msra.mxu0 %v2036_v16 }
  0xa4   :  { %1868 = vmatprep.subr.bf16.mxu0 %v2355_v1 }
  0xa7   :  { %1869 = vmatpush3.bf16.msra.mxu0 %v2037_v17  ;;  %v747_v17 = vlaneseq }
  0xa8   :  { %1870 = vmatprep.subr.bf16.mxu0 %v2355_v1 }
  0xab   :  { %1871 = vmatpush3.bf16.msra.mxu0 %v2038_v18  ;;  %v2542_v18 = vshrl.u32 %v747_v17, 7 }
 0x14e   :  { %v361_v29 = vpop.f32.mrf.mxu0 }
 0x14f   :  { %v411_v34 = vpack.c.bf16 %v361_v29, %v361_v29 }
 0x150   :  { %v363_v30 = vpop.f32.mrf.mxu0  ;;  %v404_v36 = vpop.f32.mrf.mxu1 }
 0x151   :  { %v413_v31 = vpack.c.bf16 %v363_v30, %v363_v30  ;;  %v520_v38 = vpack.c.bf16 %v404_v36, %v404_v36  ;;  %v2039_v30 = vld [vmem:[#allocation11 + $0x70] ss:$8 sps:$4 sm:$0xff]   ;;  %v2050_v36 = vld [vmem:[#allocation11 + $0x44] ss:$8 sps:$4 sm:$0xff]  }
 0x152   :  { %v365_v32 = vpop.f32.mrf.mxu0  ;;  %v1830_v37 = vpop.f32.mrf.mxu1 }
 0x153   :  { %1833 = vmatpush3.bf16.xpose.msra.mxu1 %v413_v31  ;;  %v412_v42 = vpack.c.bf16 %v365_v32, %v365_v32  ;;  %v527_v43 = vsel %vm525_vm1, %v520_v38, 0  ;;  %v2041_v31 = vld [vmem:[#allocation11 + $0x74] ss:$8 sps:$4 sm:$0xff]   ;;  %v2044_v32 = vld [vmem:[#allocation11 + $0x64] ss:$8 sps:$4 sm:$0xff]  }
 0x154   :  { %1838 = vmatprep.subr.bf16.mxu1 %v2355_v1  ;;  %v367_v33 = vpop.f32.mrf.mxu0  ;;  %v407_v39 = vpop.f32.mrf.mxu1  ;;  %967 = vmatprep.subr.bf16.mxu0 %v2041_v31  ;;  %v2048_v37 = vld [vmem:[#allocation11 + $0x40] ss:$8 sps:$4 sm:$0xff]  }
 0x155   :  { %v414_v35 = vpack.c.bf16 %v367_v33, %v367_v33  ;;  %v521_v40 = vpack.c.bf16 %v407_v39, %v407_v39  ;;  %v2042_v33 = vld [vmem:[#allocation11 + $0x60] ss:$8 sps:$4 sm:$0xff]  }
 0x156   :  { %v1831_v41 = vpop.f32.mrf.mxu1 }
 0x157   :  { %v573_v44 = vsel %vm525_vm1, %v521_v40, 0 }
 0x15a   :  { %1835 = vmatmul.mubr.bf16.vlgmr.msra.gmra.mxu1 %v411_v34  ;;  %v2047_v34 = vld [vmem:[#allocation11 + $0x54] ss:$8 sps:$4 sm:$0xff]  }
 0x15b   :  { %1839 = vmatpush3.bf16.xpose.msra.mxu1 %v414_v35  ;;  %1840 = vmatprep.mubr.msk.bf16.mxu1 %vm2356_vm0, %v2355_v1  ;;  %v2045_v35 = vld [vmem:[#allocation11 + $0x50] ss:$8 sps:$4 sm:$0xff]  }
 0x15c   :  { %1844 = vmatprep.subr.bf16.mxu1 %v2355_v1 }
 0x162   :  { %1841 = vmatmul.mubr.bf16.vlgmr.msra.gmra.mxu1 %v412_v42 }
 0x163   :  { %1845 = vmatpush3.bf16.msra.mxu1 %v527_v43  ;;  %1846 = vmatprep.mubr.msk.bf16.mxu1 %vm2356_vm0, %v2355_v1 }
 0x164   :  { %1850 = vmatprep.subr.bf16.mxu1 %v2355_v1 }
 0x21a   :  { %v449_v45 = vpop.f32.mrf.mxu1 }
 0x21b   :  { %v496_v46 = vsel %vm495_vm2, %v449_v45, -inf }
 0x21c   :  { %497 = vmax.xlane.f32.xlu0 %v496_v46  ;;  %v1836_v47 = vpop.f32.mrf.mxu1  ;;  %v2053_v46 = vld [vmem:[#allocation11 + $0x34] ss:$8 sps:$4 sm:$0xff]  }
 0x21d   :  { %v2054_v47 = vld [vmem:[#allocation10 + $0x38] sm:$0xff]  }
 0x21e   :  { %v452_v48 = vpop.f32.mrf.mxu1 }
 0x21f   :  { %v2057_v48 = vld [vmem:[#allocation11 + $0x24] ss:$8 sps:$4 sm:$0xff]  }
 0x220   :  { %v1837_v49 = vpop.f32.mrf.mxu1 }
 0x221   :  { %v2058_v49 = vld [vmem:[#allocation10 + $0x30] sm:$0xff]  }
 0x222   :  { %v489_v50 = vpop.f32.mrf.mxu1 }
 0x223   :  { %v499_v51 = vsel %vm495_vm2, %v489_v50, -inf }
 0x224   :  { %500 = vmax.xlane.f32.xlu0 %v499_v51  ;;  %v1842_v52 = vpop.f32.mrf.mxu1  ;;  %v2059_v51 = vld [vmem:[#allocation11 + $0x10] ss:$8 sps:$4 sm:$0xff]  }
 0x225   :  { %v2062_v52 = vld [vmem:[#allocation10 + $0x28] sm:$0xff]  }
 0x226   :  { %v492_v53 = vpop.f32.mrf.mxu1 }
 0x227   :  { %v2063_v53 = vld [vmem:[#allocation11] ss:$8 sps:$4 sm:$0xff]  }
 0x228   :  { %v1843_v54 = vpop.f32.mrf.mxu1 }
 0x229   :  { %v2065_v54 = vld [vmem:[#allocation11 + $0x4] ss:$8 sps:$4 sm:$0xff]  }
 0x2a5   :  { %v498_v55 = vpop.xlane.xlu0 %497 }
 0x2a6   :  { %v502_v56 = vsub.f32 %v449_v45, %v498_v55  ;;  %v2066_v55 = vld [vmem:[#allocation10 + $0x20] sm:$0xff]  }
 0x2a8   :  { %v504_v57 = vmul.f32 1.442695, %v502_v56  ;;  %v865_v56 = vld [vmem:[#allocation5] sm:$0xff] }
 0x2aa   :  { %2095 = vpow2.f32 %v504_v57  ;;  %v866_v57 = vld [vmem:[#allocation5 + $0x8] sm:$0xff] }
 0x2ad   :  { %v501_v58 = vpop.xlane.xlu0 %500 }
 0x2ae   :  { %v503_v59 = vsub.f32 %v489_v50, %v501_v58  ;;  %v2061_v50 = vld [vmem:[#allocation11 + $0x14] ss:$8 sps:$4 sm:$0xff]   ;;  %v869_v58 = vpack.c.bf16 %v866_v57, %v865_v56 }
 0x2b0   :  { %v506_v60 = vmul.f32 1.442695, %v503_v59  ;;  %v2067_v59 = vld [vmem:[#allocation10 + $0x18] sm:$0xff]  }
 0x2b2   :  { %2097 = vpow2.f32 %v506_v60  ;;  %v867_v60 = vld [vmem:[#allocation5 + $0x10] sm:$0xff] }
 0x2b7   :  { %v2096_v61 = vpop.eup %2095 }
 0x2b8   :  { %v508_v62 = vsel %vm495_vm2, %v2096_v61, 0.0 }
 0x2b9   :  { %509 = vadd.xlane.f32.xlu1 %v508_v62  ;;  %v2068_v62 = vld [vmem:[#allocation10 + $0x10] sm:$0xff]  }
 0x2bf   :  { %v2098_v63 = vpop.eup %2097 }
 0x2c0   :  { %v511_v2 = vsel %vm495_vm2, %v2098_v63, 0.0 }
 0x2c1   :  { %512 = vadd.xlane.f32.xlu1 %v511_v2  ;;  %v2069_v2 = vld [vmem:[#allocation10 + $0x8] sm:$0xff]  }
 0x342   :  { %v510_v8 = vpop.xlane.xlu1 %509 }
 0x343   :  { %2099 = vrcp.f32 %v510_v8 }
 0x34a   :  { %v513_v9 = vpop.xlane.xlu1 %512 }
 0x34b   :  { %2101 = vrcp.f32 %v513_v9 }
 0x350   :  { %v2100_v10 = vpop.eup %2099 }
 0x351   :  { %v515_v11 = vmul.f32 %v2100_v10, %v2096_v61  ;;  %v868_v61 = vld [vmem:[#allocation5 + $0x18] sm:$0xff] }
 0x353   :  { %v518_v12 = vpack.c.bf16 %v515_v11, %v515_v11 }
 0x355   :  { %1847 = vmatmul.mubr.msk.bf16.vlgmr.msra.gmra.mxu1 %vm495_vm2, %v518_v12 }
 0x356   :  { %1851 = vmatpush3.bf16.msra.mxu1 %v573_v44  ;;  %1852 = vmatprep.mubr.msk.bf16.mxu1 %vm2356_vm0, %v2355_v1 }
 0x357   :  { %1876 = vmatprep.subr.bf16.mxu1 %v2355_v1 }
 0x358   :  { %v2102_v13 = vpop.eup %2101 }
 0x359   :  { %v517_v14 = vmul.f32 %v2102_v13, %v2098_v63  ;;  %v870_v63 = vpack.c.bf16 %v868_v61, %v867_v60 }
 0x35b   :  { %v519_v15 = vpack.c.bf16 %v517_v14, %v517_v14 }
 0x35d   :  { %1853 = vmatmul.mubr.msk.bf16.vlgmr.msra.gmra.mxu1 %vm495_vm2, %v519_v15 }
 0x35e   :  { %1892 = vmatprep.mubr.msk.bf16.mxu1 %vm2356_vm0, %v2355_v1  ;;  %1877 = vmatpush3.bf16.msra.mxu1 %v2054_v47 }
 0x35f   :  { %1878 = vmatprep.subr.bf16.mxu1 %v2355_v1 }
 0x362   :  { %1879 = vmatpush3.bf16.msra.mxu1 %v2058_v49 }
 0x363   :  { %1880 = vmatprep.subr.bf16.mxu1 %v2355_v1 }
 0x366   :  { %1881 = vmatpush3.bf16.msra.mxu1 %v2062_v52 }
 0x367   :  { %1882 = vmatprep.subr.bf16.mxu1 %v2355_v1 }
 0x36a   :  { %1883 = vmatpush3.bf16.msra.mxu1 %v2066_v55 }
 0x36b   :  { %1884 = vmatprep.subr.bf16.mxu1 %v2355_v1 }
 0x36e   :  { %1885 = vmatpush3.bf16.msra.mxu1 %v2067_v59 }
 0x36f   :  { %1886 = vmatprep.subr.bf16.mxu1 %v2355_v1 }
 0x372   :  { %1887 = vmatpush3.bf16.msra.mxu1 %v2068_v62 }
 0x373   :  { %1888 = vmatprep.subr.bf16.mxu1 %v2355_v1 }
 0x376   :  { %1889 = vmatpush3.bf16.msra.mxu1 %v2069_v2 }
 0x377   :  { %1890 = vmatprep.subr.bf16.mxu1 %v2355_v1 }
 0x37a   :  { %1891 = vmatpush3.bf16.msra.mxu1 %v2070_v3 }
 0x37b   :  { %1896 = vmatprep.subr.bf16.mxu1 %v2355_v1 }
 0x415   :  { %v563_v19 = vpop.f32.mrf.mxu1 }
 0x417   :  { %v1848_v20 = vpop.f32.mrf.mxu1 }
 0x418   :  { %v2548_v20 = vld [vmem:[%s2645_s10] sm:$0x3f] }
 0x419   :  { %v566_v21 = vpop.f32.mrf.mxu1 }
 0x41b   :  { %v1849_v22 = vpop.f32.mrf.mxu1 }
 0x41d   :  { %v609_v25 = vpop.f32.mrf.mxu1 }
 0x41e   :  { %v615_v26 = vpack.c.bf16 %v609_v25, %v563_v19  ;;  %v749_v19 = vsub.s32 0, %v2542_v18 }
 0x41f   :  { %v1854_v27 = vpop.f32.mrf.mxu1 }
 0x420   :  { %1873 = vmatmul.mubr.bf16.vlgmr.msra.gmra.mxu0 %v615_v26  ;;  %v750_v26 = vrot.slane %v2548_v20, %v749_v19  ;;  %v755_v27 = vsub.s32 1, %v2542_v18 }
 0x421   :  { %v612_v28 = vpop.f32.mrf.mxu1  ;;  %999 = vmatprep.mubr.bf16.mxu0 %v2354_v0  ;;  %968 = vmatpush1.bf16.msra.mxu0 %v2039_v30 }
 0x422   :  { %969 = vmatprep.subr.bf16.mxu0 %v2044_v32  ;;  %v756_v32 = vrot.slane %v2548_v20, %v755_v27 }
 0x423   :  { %v1855_v29 = vpop.f32.mrf.mxu1 }
 0x425   :  { %970 = vmatpush1.bf16.msra.mxu0 %v2042_v33 }
 0x426   :  { %971 = vmatprep.subr.bf16.mxu0 %v2047_v34 }
 0x429   :  { %972 = vmatpush1.bf16.msra.mxu0 %v2045_v35 }
 0x42a   :  { %973 = vmatprep.subr.bf16.mxu0 %v2050_v36 }
 0x42d   :  { %974 = vmatpush1.bf16.msra.mxu0 %v2048_v37 }
 0x42e   :  { %975 = vmatprep.subr.bf16.mxu0 %v2053_v46 }
 0x4e0   :  { %v714_v38 = vpop.f32.mrf.mxu0 }
 0x4e1   :  { %v2519_v39 = vadd.f32 %v714_v38, %v2476_v23  ;;  %v2051_v23 = vld [vmem:[#allocation11 + $0x30] ss:$8 sps:$4 sm:$0xff]  }
 0x4e2   :  { %v1874_v40 = vpop.f32.mrf.mxu0  ;;  %976 = vmatpush1.bf16.msra.mxu0 %v2051_v23 }
 0x4e3   :  { %721 = vadd.xlane.f32.xlu0 %v2519_v39  ;;  %v725_v43 = vmul.f32 %v2519_v39, %v2519_v39  ;;  %977 = vmatprep.subr.bf16.mxu0 %v2057_v48 }
 0x4e4   :  { %v717_v41 = vpop.f32.mrf.mxu0 }
 0x4e5   :  { %v2523_v42 = vadd.f32 %v717_v41, %v2478_v24  ;;  %v2055_v24 = vld [vmem:[#allocation11 + $0x20] ss:$8 sps:$4 sm:$0xff]  }
 0x4e6   :  { %v1875_v44 = vpop.f32.mrf.mxu0  ;;  %978 = vmatpush1.bf16.msra.mxu0 %v2055_v24 }
 0x4e7   :  { %727 = vadd.xlane.f32.xlu0 %v725_v43  ;;  %723 = vadd.xlane.f32.xlu1 %v2523_v42  ;;  %v726_v45 = vmul.f32 %v2523_v42, %v2523_v42 }
 0x4e8   :  { %979 = vmatprep.subr.bf16.mxu0 %v2061_v50 }
 0x4ea   :  { %980 = vmatpush1.bf16.msra.mxu0 %v2059_v51 }
 0x4eb   :  { %729 = vadd.xlane.f32.xlu1 %v726_v45  ;;  %981 = vmatprep.subr.bf16.mxu0 %v2065_v54 }
 0x4ee   :  { %982 = vmatpush1.bf16.msra.mxu0 %v2063_v53 }
 0x4ef   :  { %1920 = vmatprep.subr.bf16.mxu0 %v2355_v1 }
 0x4f1   :  { %1000 = vmatmul.mubr.bf16.vlgmr.msra.gmra.mxu0 %v869_v58 }
 0x4f2   :  { %1009 = vmatprep.mubr.bf16.mxu0 %v2354_v0 }
 0x4f9   :  { %1010 = vmatmul.mubr.bf16.gmra.mxu0 %v870_v63 }
 0x4fa   :  { %1936 = vmatprep.mubr.msk.bf16.mxu0 %vm2356_vm0, %v2355_v1 }
 0x56c   :  { %v722_v0 = vpop.xlane.xlu0 %721 }
 0x56d   :  { %v731_v4 = vmul.f32 0.03125, %v722_v0 }
 0x56f   :  { %v735_v7 = vmul.f32 %v731_v4, %v731_v4  ;;  %v739_v21 = vsub.f32 %v2519_v39, %v731_v4 }
 0x570   :  { %v728_v5 = vpop.xlane.xlu0 %727  ;;  %v724_v6 = vpop.xlane.xlu1 %723 }
 0x571   :  { %v733_v8 = vmul.f32 0.03125, %v728_v5  ;;  %v732_v9 = vmul.f32 0.03125, %v724_v6 }
 0x573   :  { %v737_v10 = vsub.f32 %v733_v8, %v735_v7  ;;  %v736_v13 = vmul.f32 %v732_v9, %v732_v9  ;;  %v740_v28 = vsub.f32 %v2523_v42, %v732_v9  ;;  %v2071_v8 = vld [vmem:[#allocation13 + $0x38] sm:$0xff]   ;;  %v2072_v9 = vld [vmem:[#allocation13 + $0x30] sm:$0xff]  }
 0x574   :  { %v730_v11 = vpop.xlane.xlu1 %729  ;;  %1921 = vmatpush3.bf16.msra.mxu0 %v2071_v8 }
 0x575   :  { %v741_v12 = vadd.f32 1e-05, %v737_v10  ;;  %v734_v14 = vmul.f32 0.03125, %v730_v11  ;;  %1922 = vmatprep.subr.bf16.mxu0 %v2355_v1  ;;  %v2073_v10 = vld [vmem:[#allocation13 + $0x28] sm:$0xff]   ;;  %v2074_v11 = vld [vmem:[#allocation13 + $0x20] sm:$0xff]  }
 0x577   :  { %2103 = vrsqrt.f32 %v741_v12  ;;  %v738_v15 = vsub.f32 %v734_v14, %v736_v13  ;;  %v2075_v12 = vld [vmem:[#allocation13 + $0x18] sm:$0xff]  }
 0x578   :  { %1923 = vmatpush3.bf16.msra.mxu0 %v2072_v9 }
 0x579   :  { %v742_v16 = vadd.f32 1e-05, %v738_v15  ;;  %1924 = vmatprep.subr.bf16.mxu0 %v2355_v1 }
 0x57b   :  { %2105 = vrsqrt.f32 %v742_v16 }
 0x57c   :  { %1925 = vmatpush3.bf16.msra.mxu0 %v2073_v10 }
 0x57d   :  { %1926 = vmatprep.subr.bf16.mxu0 %v2355_v1 }
 0x580   :  { %1927 = vmatpush3.bf16.msra.mxu0 %v2074_v11 }
 0x581   :  { %1928 = vmatprep.subr.bf16.mxu0 %v2355_v1 }
 0x584   :  { %v2104_v22 = vpop.eup %2103  ;;  %1929 = vmatpush3.bf16.msra.mxu0 %v2075_v12  ;;  %v1357_v12 = vsub.s32 3, %v2542_v18 }
 0x585   :  { %v745_v25 = vmul.f32 %v2104_v22, %v739_v21  ;;  %1930 = vmatprep.subr.bf16.mxu0 %v2355_v1 }
 0x587   :  { %v751_v31 = vmul.f32 %v750_v26, %v745_v25 }
 0x588   :  { %v2106_v29 = vpop.eup %2105 }
 0x589   :  { %v746_v30 = vmul.f32 %v2106_v29, %v740_v28  ;;  %v2559_v34 = vadd.f32 %v756_v32, %v751_v31  ;;  %v2076_v29 = vld [vmem:[#allocation13 + $0x10] sm:$0xff]   ;;  %v2078_v31 = vld [vmem:[#allocation13] sm:$0xff]  }
 0x58a   :  { %1931 = vmatpush3.bf16.msra.mxu0 %v2076_v29  ;;  %v2089_v29 = vld [vmem:[#allocation16 + $0x28] sm:$0xff]  }
 0x58b   :  { %v752_v33 = vmul.f32 %v750_v26, %v746_v30  ;;  %1932 = vmatprep.subr.bf16.mxu0 %v2355_v1  ;;  %v2077_v30 = vld [vmem:[#allocation13 + $0x8] sm:$0xff]  }
 0x58d   :  { %v2561_v35 = vadd.f32 %v756_v32, %v752_v33 }
 0x58e   :  { %1933 = vmatpush3.bf16.msra.mxu0 %v2077_v30  ;;  %v2090_v30 = vld [vmem:[#allocation16 + $0x20] sm:$0xff]  }
 0x58f   :  { %v759_v36 = vpack.c.bf16 %v2561_v35, %v2559_v34  ;;  %1934 = vmatprep.subr.bf16.mxu0 %v2355_v1 }
 0x591   :  { %1893 = vmatmul.mubr.bf16.vlgmr.msra.gmra.mxu1 %v759_v36 }
 0x592   :  { %1898 = vmatprep.mubr.msk.bf16.mxu1 %vm2356_vm0, %v2355_v1  ;;  %1935 = vmatpush3.bf16.msra.mxu0 %v2078_v31  ;;  %v2091_v31 = vld [vmem:[#allocation16 + $0x18] sm:$0xff]  }
 0x593   :  { %1960 = vmatprep.subr.bf16.mxu0 %v2355_v1 }
 0x5b1   :  { %v1001_v37 = vpop.f32.mrf.mxu0 }
 0x5b3   :  { %v1003_v38 = vpop.f32.mrf.mxu0 }
 0x5b5   :  { %v1005_v39 = vpop.f32.mrf.mxu0 }
 0x5b6   :  { %v1022_v40 = vpack.c.bf16 %v1005_v39, %v1001_v37 }
 0x5b7   :  { %v1007_v41 = vpop.f32.mrf.mxu0 }
 0x5b8   :  { %1897 = vmatpush3.bf16.xpose.msra.mxu1 %v1022_v40  ;;  %v1129_v50 = vpack.c.bf16 %v1007_v41, %v1003_v38 }
 0x5b9   :  { %1902 = vmatprep.subr.bf16.mxu1 %v2355_v1  ;;  %v1011_v42 = vpop.f32.mrf.mxu0 }
 0x5bb   :  { %v2568_v43 = vpop.f32.mrf.mxu0 }
 0x5bd   :  { %v1015_v45 = vpop.f32.mrf.mxu0 }
 0x5be   :  { %v1023_v46 = vpack.c.bf16 %v1015_v45, %v1011_v42 }
 0x5bf   :  { %v1017_v16 = vpop.f32.mrf.mxu0 }
 0x5c0   :  { %v1130_v22 = vpack.c.bf16 %v1017_v16, %v2568_v43 }
 0x651   :  { %v858_v44 = vpop.f32.mrf.mxu1 }
 0x652   :  { %v1020_v23 = vpack.c.bf16 %v858_v44, %v858_v44 }
 0x653   :  { %v1894_v47 = vpop.f32.mrf.mxu1 }
 0x654   :  { %1899 = vmatmul.mubr.bf16.vlgmr.msra.gmra.mxu1 %v1020_v23 }
 0x655   :  { %1903 = vmatpush3.bf16.xpose.msra.mxu1 %v1023_v46  ;;  %v861_v48 = vpop.f32.mrf.mxu1  ;;  %1904 = vmatprep.mubr.msk.bf16.mxu1 %vm2356_vm0, %v2355_v1 }
 0x656   :  { %1908 = vmatprep.subr.bf16.mxu1 %v2355_v1  ;;  %v1021_v49 = vpack.c.bf16 %v861_v48, %v861_v48 }
 0x657   :  { %v1895_v24 = vpop.f32.mrf.mxu1 }
 0x65c   :  { %1905 = vmatmul.mubr.bf16.vlgmr.msra.gmra.mxu1 %v1021_v49  ;;  %v2079_v49 = vld [vmem:[#allocation14 + $0x38] sm:$0xff]  }
 0x65d   :  { %1909 = vmatpush3.bf16.msra.mxu1 %v1129_v50  ;;  %1910 = vmatprep.mubr.msk.bf16.mxu1 %vm2356_vm0, %v2355_v1  ;;  %v2080_v50 = vld [vmem:[#allocation14 + $0x30] sm:$0xff]  }
 0x65e   :  { %1914 = vmatprep.subr.bf16.mxu1 %v2355_v1 }
 0x714   :  { %v1058_v51 = vpop.f32.mrf.mxu1 }
 0x715   :  { %v1105_v52 = vsel %vm1104_vm3, %v1058_v51, -inf }
 0x716   :  { %1106 = vmax.xlane.f32.xlu0 %v1105_v52  ;;  %v1900_v53 = vpop.f32.mrf.mxu1  ;;  %v2084_v52 = vld [vmem:[#allocation14 + $0x10] sm:$0xff]  }
 0x717   :  { %v2085_v53 = vld [vmem:[#allocation14 + $0x8] sm:$0xff]  }
 0x718   :  { %v1061_v54 = vpop.f32.mrf.mxu1 }
 0x719   :  { %v2086_v54 = vld [vmem:[#allocation14] sm:$0xff]  }
 0x71a   :  { %v1901_v55 = vpop.f32.mrf.mxu1 }
 0x71b   :  { %v2087_v55 = vld [vmem:[#allocation16 + $0x38] sm:$0xff]  }
 0x71c   :  { %v1098_v56 = vpop.f32.mrf.mxu1 }
 0x71d   :  { %v1108_v57 = vsel %vm1104_vm3, %v1098_v56, -inf }
 0x71e   :  { %1109 = vmax.xlane.f32.xlu1 %v1108_v57  ;;  %v1906_v58 = vpop.f32.mrf.mxu1 }
 0x720   :  { %v1101_v59 = vpop.f32.mrf.mxu1 }
 0x722   :  { %v1907_v60 = vpop.f32.mrf.mxu1 }
 0x79f   :  { %v1107_v61 = vpop.xlane.xlu0 %1106 }
 0x7a0   :  { %v1111_v62 = vsub.f32 %v1058_v51, %v1107_v61  ;;  %v2082_v51 = vld [vmem:[#allocation14 + $0x20] sm:$0xff]  }
 0x7a2   :  { %v1113_v63 = vmul.f32 1.442695, %v1111_v62 }
 0x7a4   :  { %2107 = vpow2.f32 %v1113_v63 }
 0x7a7   :  { %v1110_v2 = vpop.xlane.xlu1 %1109 }
 0x7a8   :  { %v1112_v3 = vsub.f32 %v1098_v56, %v1110_v2 }
 0x7aa   :  { %v1115_v0 = vmul.f32 1.442695, %v1112_v3 }
 0x7ac   :  { %2109 = vpow2.f32 %v1115_v0 }
 0x7b1   :  { %v2108_v4 = vpop.eup %2107 }
 0x7b2   :  { %v1117_v5 = vsel %vm1104_vm3, %v2108_v4, 0.0 }
 0x7b3   :  { %1118 = vadd.xlane.f32.xlu0 %v1117_v5 }
 0x7b9   :  { %v2110_v6 = vpop.eup %2109 }
 0x7ba   :  { %v1120_v7 = vsel %vm1104_vm3, %v2110_v6, 0.0 }
 0x7bb   :  { %1121 = vadd.xlane.f32.xlu1 %v1120_v7  ;;  %v1351_v7 = vsub.s32 2, %v2542_v18 }
 0x7bd   :  { %v1352_v11 = vrot.slane %v2548_v20, %v1351_v7 }
 0x83c   :  { %v1119_v13 = vpop.xlane.xlu0 %1118 }
 0x83d   :  { %2111 = vrcp.f32 %v1119_v13 }
 0x844   :  { %v1122_v14 = vpop.xlane.xlu1 %1121 }
 0x845   :  { %2113 = vrcp.f32 %v1122_v14 }
 0x84a   :  { %v2112_v15 = vpop.eup %2111 }
 0x84b   :  { %v1124_v17 = vmul.f32 %v2112_v15, %v2108_v4 }
 0x84d   :  { %v1127_v21 = vpack.c.bf16 %v1124_v17, %v1124_v17  ;;  %v1358_v17 = vrot.slane %v2548_v20, %v1357_v12  ;;  %v1629_v12 = vsub.s32 5, %v2542_v18 }
 0x84f   :  { %1911 = vmatmul.mubr.msk.bf16.vlgmr.msra.gmra.mxu1 %vm1104_vm3, %v1127_v21 }
 0x850   :  { %1915 = vmatpush3.bf16.msra.mxu1 %v1130_v22  ;;  %1916 = vmatprep.mubr.msk.bf16.mxu1 %vm2356_vm0, %v2355_v1 }
 0x851   :  { %1940 = vmatprep.subr.bf16.mxu1 %v2355_v1 }
 0x852   :  { %v2114_v25 = vpop.eup %2113 }
 0x853   :  { %v1126_v26 = vmul.f32 %v2114_v25, %v2110_v6 }
 0x855   :  { %v1128_v28 = vpack.c.bf16 %v1126_v26, %v1126_v26 }
 0x857   :  { %1917 = vmatmul.mubr.msk.bf16.vlgmr.msra.gmra.mxu1 %vm1104_vm3, %v1128_v28  ;;  %v2088_v28 = vld [vmem:[#allocation16 + $0x30] sm:$0xff]  }
 0x858   :  { %1956 = vmatprep.mubr.msk.bf16.mxu1 %vm2356_vm0, %v2355_v1  ;;  %1941 = vmatpush3.bf16.msra.mxu1 %v2079_v49 }
 0x859   :  { %1942 = vmatprep.subr.bf16.mxu1 %v2355_v1 }
 0x85c   :  { %1943 = vmatpush3.bf16.msra.mxu1 %v2080_v50 }
 0x85d   :  { %1944 = vmatprep.subr.bf16.mxu1 %v2355_v1 }
 0x90f   :  { %v1168_v32 = vpop.f32.mrf.mxu1 }
 0x911   :  { %v1912_v33 = vpop.f32.mrf.mxu1 }
 0x912   :  { %v2093_v33 = vld [vmem:[#allocation16 + $0x8] sm:$0xff]  }
 0x913   :  { %v1171_v36 = vpop.f32.mrf.mxu1 }
 0x914   :  { %v2094_v36 = vld [vmem:[#allocation16] sm:$0xff]  }
 0x915   :  { %v1913_v37 = vpop.f32.mrf.mxu1 }
 0x916   :  { %v165_v37 = vld [vmem:[%s2644_s9] sm:$0x3]  ;;  %s2357_s9 = smov [#allocation17]  }
 0x917   :  { %v1211_v38 = vpop.f32.mrf.mxu1  ;;  %s1640_s28 = sshll.u32 %s2357_s9, 4  ;;  %s1641_s28 = int_to_ptr.vmem [resolvable:$true] %s1640_s28 }
 0x918   :  { %v1217_v39 = vpack.c.bf16 %v1211_v38, %v1168_v32  ;;  %v2092_v32 = vld [vmem:[#allocation16 + $0x10] sm:$0xff]   ;;  %v1381_v38 = vrot.slane %v165_v37, %v749_v19  ;;  %s2307_s26 = scalar_lea.vmem %s1641_s28, 256  ;;  %p2312_p4 = scmp.lt.s32.totalorder %s1641_s28, %s1641_s28 }
 0x919   :  { %v1918_v40 = vpop.f32.mrf.mxu1  ;;  %p2308_p3 = scmp.ne.s32.totalorder %s1641_s28, %s2307_s26  ;;  %p2313_p5 = scmp.lt.s32.totalorder %s2307_s26, %s2307_s26 }
 0x91a   :  { %1937 = vmatmul.mubr.bf16.vlgmr.msra.gmra.mxu0 %v1217_v39 }
 0x91b   :  { %v1214_v41 = vpop.f32.mrf.mxu1  ;;  %1976 = vmatprep.mubr.msk.bf16.mxu0 %vm2356_vm0, %v2355_v1  ;;  %1961 = vmatpush3.bf16.msra.mxu0 %v2087_v55  ;;  %p2314_p6 = por %p2313_p5, %p2312_p4 }
 0x91c   :  { %1962 = vmatprep.subr.bf16.mxu0 %v2355_v1 }
 0x91d   :  { %v1919_v42 = vpop.f32.mrf.mxu1  ;;  %p2315_p7 = pnand %p2314_p6, %p2308_p3 }
 0x91f   :  { %1963 = vmatpush3.bf16.msra.mxu0 %v2088_v28 }
 0x920   :  { %1964 = vmatprep.subr.bf16.mxu0 %v2355_v1 }
 0x923   :  { %1965 = vmatpush3.bf16.msra.mxu0 %v2089_v29 }
 0x924   :  { %1966 = vmatprep.subr.bf16.mxu0 %v2355_v1 }
 0x927   :  { %1967 = vmatpush3.bf16.msra.mxu0 %v2090_v30 }
 0x928   :  { %1968 = vmatprep.subr.bf16.mxu0 %v2355_v1 }
 0x92b   :  { %1969 = vmatpush3.bf16.msra.mxu0 %v2091_v31 }
 0x92c   :  { %1970 = vmatprep.subr.bf16.mxu0 %v2355_v1 }
 0x92f   :  { %1971 = vmatpush3.bf16.msra.mxu0 %v2092_v32 }
 0x930   :  { %1972 = vmatprep.subr.bf16.mxu0 %v2355_v1 }
 0x933   :  { %1973 = vmatpush3.bf16.msra.mxu0 %v2093_v33 }
 0x934   :  { %1974 = vmatprep.subr.bf16.mxu0 %v2355_v1 }
 0x937   :  { %1975 = vmatpush3.bf16.msra.mxu0 %v2094_v36 }
 0x9da   :  { %v1316_v43 = vpop.f32.mrf.mxu0 }
 0x9db   :  { %v1317_v44 = vadd.f32 %v1316_v43, %v2559_v34  ;;  %v2081_v34 = vld [vmem:[#allocation14 + $0x28] sm:$0xff]  }
 0x9dc   :  { %v1938_v45 = vpop.f32.mrf.mxu0  ;;  %1945 = vmatpush3.bf16.msra.mxu1 %v2081_v34 }
 0x9dd   :  { %1323 = vadd.xlane.f32.xlu0 %v1317_v44  ;;  %v1327_v47 = vmul.f32 %v1317_v44, %v1317_v44  ;;  %1946 = vmatprep.subr.bf16.mxu1 %v2355_v1 }
 0x9de   :  { %v1319_v23 = vpop.f32.mrf.mxu0 }
 0x9df   :  { %v1320_v46 = vadd.f32 %v1319_v23, %v2561_v35  ;;  %v2083_v35 = vld [vmem:[#allocation14 + $0x18] sm:$0xff]  }
 0x9e0   :  { %v1939_v48 = vpop.f32.mrf.mxu0  ;;  %1947 = vmatpush3.bf16.msra.mxu1 %v2082_v51  ;;  %v1503_v51 = vrot.slane %v165_v37, %v755_v27 }
 0x9e1   :  { %1329 = vadd.xlane.f32.xlu0 %v1327_v47  ;;  %1325 = vadd.xlane.f32.xlu1 %v1320_v46  ;;  %v1328_v24 = vmul.f32 %v1320_v46, %v1320_v46 }
 0x9e2   :  { %1948 = vmatprep.subr.bf16.mxu1 %v2355_v1 }
 0x9e4   :  { %1949 = vmatpush3.bf16.msra.mxu1 %v2083_v35 }
 0x9e5   :  { %1331 = vadd.xlane.f32.xlu1 %v1328_v24  ;;  %1950 = vmatprep.subr.bf16.mxu1 %v2355_v1 }
 0x9e8   :  { %1951 = vmatpush3.bf16.msra.mxu1 %v2084_v52 }
 0x9e9   :  { %1952 = vmatprep.subr.bf16.mxu1 %v2355_v1 }
 0x9ec   :  { %1953 = vmatpush3.bf16.msra.mxu1 %v2085_v53 }
 0x9ed   :  { %1954 = vmatprep.subr.bf16.mxu1 %v2355_v1 }
 0x9f0   :  { %1955 = vmatpush3.bf16.msra.mxu1 %v2086_v54 }
 0xa66   :  { %v1324_v56 = vpop.xlane.xlu0 %1323 }
 0xa67   :  { %v1333_v57 = vmul.f32 0.03125, %v1324_v56 }
 0xa69   :  { %v1337_v60 = vmul.f32 %v1333_v57, %v1333_v57  ;;  %v1341_v8 = vsub.f32 %v1317_v44, %v1333_v57 }
 0xa6a   :  { %v1330_v58 = vpop.xlane.xlu0 %1329  ;;  %v1326_v59 = vpop.xlane.xlu1 %1325 }
 0xa6b   :  { %v1335_v61 = vmul.f32 0.03125, %v1330_v58  ;;  %v1334_v62 = vmul.f32 0.03125, %v1326_v59 }
 0xa6d   :  { %v1339_v63 = vsub.f32 %v1335_v61, %v1337_v60  ;;  %v1338_v0 = vmul.f32 %v1334_v62, %v1334_v62  ;;  %v1342_v13 = vsub.f32 %v1320_v46, %v1334_v62 }
 0xa6e   :  { %v1332_v2 = vpop.xlane.xlu1 %1331 }
 0xa6f   :  { %v1343_v3 = vadd.f32 1e-05, %v1339_v63  ;;  %v1336_v4 = vmul.f32 0.03125, %v1332_v2 }
 0xa71   :  { %2115 = vrsqrt.f32 %v1343_v3  ;;  %v1340_v5 = vsub.f32 %v1336_v4, %v1338_v0 }
 0xa73   :  { %v1344_v6 = vadd.f32 1e-05, %v1340_v5 }
 0xa75   :  { %2117 = vrsqrt.f32 %v1344_v6 }
 0xa7e   :  { %v2116_v9 = vpop.eup %2115 }
 0xa7f   :  { %v1347_v10 = vmul.f32 %v2116_v9, %v1341_v8 }
 0xa81   :  { %v1353_v16 = vmul.f32 %v1352_v11, %v1347_v10 }
 0xa82   :  { %v2118_v14 = vpop.eup %2117 }
 0xa83   :  { %v1348_v15 = vmul.f32 %v2118_v14, %v1342_v13  ;;  %v1359_v22 = vadd.f32 %v1358_v17, %v1353_v16 }
 0xa85   :  { %v1354_v21 = vmul.f32 %v1352_v11, %v1348_v15  ;;  %v1623_v11 = vsub.s32 4, %v2542_v18 }
 0xa87   :  { %v1360_v25 = vadd.f32 %v1358_v17, %v1354_v21  ;;  %v1624_v14 = vrot.slane %v2548_v20, %v1623_v11  ;;  %v1630_v17 = vrot.slane %v2548_v20, %v1629_v12 }
 0xa89   :  { %v1361_v26 = vpack.c.bf16 %v1360_v25, %v1359_v22 }
 0xa8b   :  { %1957 = vmatmul.mubr.bf16.vlgmr.msra.gmra.mxu1 %v1361_v26 }
 0xb4b   :  { %v1464_v39 = vpop.f32.mrf.mxu1 }
 0xb4c   :  { %v1465_v40 = vadd.f32 %v1464_v39, %v1381_v38 }
 0xb4d   :  { %v1958_v41 = vpop.f32.mrf.mxu1 }
 0xb4e   :  { %v1473_v42 = vmin.f32 %v1465_v40, 0.0  ;;  %vm1471_vm4 = vcmp.gt.f32.partialorder %v1465_v40, 0.0 }
 0xb4f   :  { %v1467_v43 = vpop.f32.mrf.mxu1 }
 0xb50   :  { %v1475_v44 = vmul.f32 1.442695, %v1473_v42  ;;  %v1468_v45 = vadd.f32 %v1467_v43, %v1381_v38 }
 0xb51   :  { %v1959_v23 = vpop.f32.mrf.mxu1 }
 0xb52   :  { %2119 = vpow2.f32 %v1475_v44  ;;  %v1474_v46 = vmin.f32 %v1468_v45, 0.0  ;;  %vm1472_vm5 = vcmp.gt.f32.partialorder %v1468_v45, 0.0 }
 0xb54   :  { %v1477_v1 = vmul.f32 1.442695, %v1474_v46 }
 0xb56   :  { %2121 = vpow2.f32 %v1477_v1 }
 0xb5f   :  { %v2120_v47 = vpop.eup %2119 }
 0xb60   :  { %v1732_v48 = vadd.f32 -1.0, %v2120_v47 }
 0xb62   :  { %v1481_v50 = vsel %vm1471_vm4, %v1465_v40, %v1732_v48 }
 0xb63   :  { %v2122_v24 = vpop.eup %2121 }
 0xb64   :  { %v1733_v49 = vadd.f32 -1.0, %v2122_v24 }
 0xb66   :  { %v1482_v19 = vsel %vm1472_vm5, %v1468_v45, %v1733_v49 }
 0xb67   :  { %v1483_v34 = vpack.c.bf16 %v1482_v19, %v1481_v50 }
 0xb69   :  { %1977 = vmatmul.mubr.bf16.vlgmr.msra.gmra.mxu0 %v1483_v34 }
 0xc29   :  { %v1586_v35 = vpop.f32.mrf.mxu0 }
 0xc2a   :  { %v1587_v52 = vadd.f32 %v1586_v35, %v1503_v51 }
 0xc2b   :  { %v1978_v53 = vpop.f32.mrf.mxu0 }
 0xc2c   :  { %v1593_v54 = vadd.f32 %v1587_v52, %v1359_v22 }
 0xc2d   :  { %v1589_v55 = vpop.f32.mrf.mxu0 }
 0xc2e   :  { %v1590_v56 = vadd.f32 %v1589_v55, %v1503_v51  ;;  %1595 = vadd.xlane.f32.xlu0 %v1593_v54  ;;  %v1599_v59 = vmul.f32 %v1593_v54, %v1593_v54 }
 0xc2f   :  { %v1979_v57 = vpop.f32.mrf.mxu0 }
 0xc30   :  { %v1594_v58 = vadd.f32 %v1590_v56, %v1360_v25 }
 0xc32   :  { %1601 = vadd.xlane.f32.xlu0 %v1599_v59  ;;  %1597 = vadd.xlane.f32.xlu1 %v1594_v58  ;;  %v1600_v60 = vmul.f32 %v1594_v58, %v1594_v58 }
 0xc36   :  { %1603 = vadd.xlane.f32.xlu1 %v1600_v60 }
 0xcb7   :  { %v1596_v61 = vpop.xlane.xlu0 %1595 }
 0xcb8   :  { %v1605_v62 = vmul.f32 0.03125, %v1596_v61 }
 0xcba   :  { %v1609_v3 = vmul.f32 %v1605_v62, %v1605_v62  ;;  %v1613_v13 = vsub.f32 %v1593_v54, %v1605_v62 }
 0xcbb   :  { %v1602_v63 = vpop.xlane.xlu0 %1601  ;;  %v1598_v2 = vpop.xlane.xlu1 %1597 }
 0xcbc   :  { %v1607_v27 = vmul.f32 0.03125, %v1602_v63  ;;  %v1606_v0 = vmul.f32 0.03125, %v1598_v2 }
 0xcbe   :  { %v1611_v4 = vsub.f32 %v1607_v27, %v1609_v3  ;;  %v1610_v7 = vmul.f32 %v1606_v0, %v1606_v0  ;;  %v1614_v21 = vsub.f32 %v1594_v58, %v1606_v0 }
 0xcbf   :  { %v1604_v5 = vpop.xlane.xlu1 %1603 }
 0xcc0   :  { %v1615_v6 = vadd.f32 1e-05, %v1611_v4  ;;  %v1608_v8 = vmul.f32 0.03125, %v1604_v5 }
 0xcc2   :  { %2123 = vrsqrt.f32 %v1615_v6  ;;  %v1612_v9 = vsub.f32 %v1608_v8, %v1610_v7 }
 0xcc4   :  { %v1616_v10 = vadd.f32 1e-05, %v1612_v9 }
 0xcc6   :  { %2125 = vrsqrt.f32 %v1616_v10 }
 0xccf   :  { %v2124_v15 = vpop.eup %2123 }
 0xcd0   :  { %v1619_v16 = vmul.f32 %v2124_v15, %v1613_v13 }
 0xcd2   :  { %v1625_v22 = vmul.f32 %v1624_v14, %v1619_v16 }
 0xcd3   :  { %v2126_v25 = vpop.eup %2125 }
 0xcd4   :  { %v1620_v26 = vmul.f32 %v2126_v25, %v1614_v21  ;;  %v1631_v28 = vadd.f32 %v1630_v17, %v1625_v22 }
 0xcd6   :  { %v1626_v29 = vmul.f32 %v1624_v14, %v1620_v26  ;;  %1633 = vst [vmem:[#allocation17] sm:$0xff] %v1631_v28 }
 0xcd8   :  { %v1632_v30 = vadd.f32 %v1630_v17, %v1626_v29 }
 0xcda   :  { %1634 = vst [vmem:[#allocation17 + $0x8] sm:$0xff] %v1632_v30 }
 0xcdb   :  { %2318 = shalt.err (!%p2315_p7)
}
 0xcdc   :  { %1646 = dma.vmem_to_hbm [thread:$0]  %s1641_s28, 256, %s2646_s11, [#allocation4], %s2341_s22, %s2341_s22, %s2342_s23  }
 0xcdd   :  { %2337 = dma.done.wait [#allocation4], 256  }
 0xcde   :  { %2338 = vsyncadd [#allocation4], 4294967040 }
 0xcdf   :  { %1650 = vsyncpa [#allocation3], 1 }
 0xce0   :  { %1651 = vsyncpa [#allocation6], 1 }
 0xce1   :  { %1652 = vsyncpa [#allocation9], 1 }
 0xce2   :  { %1653 = vsyncpa [#allocation12], 1 }
 0xce3   :  { %1654 = vsyncpa [#allocation15], 1 }
 0xce4   :  { %1655 = vsyncpa [#allocation4], 1 }

</bundles_post_ra>
